<compile_context>
chip_gen: v5e
topology: v5e:2x2
jax: 0.10.0
libtpu: 0.0.40
codegen_flags: <defaults>
</compile_context>

<pallas_src>
from functools import partial

import numpy as np
import jax
import jax.numpy as jnp
from jax import lax
from jax.experimental import pallas as pl
from jax.experimental.pallas import tpu as pltpu

KH, KW = 5, 3          # kernel_size = (5, 3)
PH, PW = 2, 1          # padding     = (2, 1)
SLOPE = 0.2            # activation_slope
BN_EPS = 1e-5


# ------------------------------- fused kernel ----------------------------------
def _fused_ae_kernel(*refs, meta, latent_idx, slope):
    """One grid step == one batch element.

    refs = [x, <per-layer consts>, x_hat, z, <per-layer padded-activation scratch>]

    Per layer (Conv2d(5x3, pad (2,1)) + eval-BatchNorm + LeakyReLU; encoder freq-stride 2,
    decoder preceded by bilinear (2,1) upsample):
      1. write the freq-zero-padded activation into a small VMEM scratch,
      2. read the KH=5 frequency taps as (strided) sublane slices, concat along lanes
         -> rows_cat (Ho, KH*W*Cin),
      3. ONE MXU dot vs. the pre-concatenated band weights B_cat (bf16 operands, f32 acc),
         add the folded bias,
      4. LeakyReLU in f32 (all layers except the very last).
    """
    n_layers = len(meta)
    n_params = sum(m["n_const"] for m in meta)
    x_ref = refs[0]
    param_refs = refs[1:1 + n_params]
    xhat_ref = refs[1 + n_params]
    z_ref = refs[2 + n_params]
    pad_refs = refs[3 + n_params:]
    assert len(pad_refs) == n_layers

    a = x_ref[0]                                           # (H0, W*C0) f32, this batch elem
    p = 0
    for l, m in enumerate(meta):
        pad_ref = pad_refs[l]
        ho, wc_in = m["h_out"], m["wc_in"]

        if m["kind"] == "enc":
            bcat_ref, bias_ref = param_refs[p], param_refs[p + 1]
            p += 2
            src, h_src, stride = a, m["h_in"], 2           # freq stride 2
        else:
            if m["h_in"] == 1:                             # bilinear x2 of one row = dup
                bcat_ref, bias_ref = param_refs[p], param_refs[p + 1]
                p += 2
                src = jnp.concatenate([a, a], axis=0)
            else:                                          # bilinear x2 as one tiny MXU dot
                u_ref, bcat_ref, bias_ref = (param_refs[p], param_refs[p + 1],
                                             param_refs[p + 2])
                p += 3
                src = jnp.dot(u_ref[...], a.astype(jnp.bfloat16),
                              preferred_element_type=jnp.float32)
            h_src, stride = m["h_up"], 1                   # conv stride 1 after upsample

        # freq-zero-padded activation in VMEM scratch (PH zero rows top & bottom)
        zero_rows = jnp.zeros((PH, wc_in), jnp.float32)
        pad_ref[0:PH, :] = zero_rows
        pad_ref[PH:PH + h_src, :] = src
        pad_ref[PH + h_src:PH + h_src + PH, :] = zero_rows

        # KH frequency taps as sublane slices (strided for the encoder), concat on lanes
        if stride == 1:
            taps = [pad_ref[kh:kh + ho, :] for kh in range(KH)]
        else:
            taps = [pad_ref[pl.ds(kh, ho, stride=stride), :] for kh in range(KH)]
        rows_cat = jnp.concatenate(taps, axis=1).astype(jnp.bfloat16)

        # ONE MXU dot per layer: explicit bf16 operands, f32 accumulation
        y = jnp.dot(rows_cat, bcat_ref[...], preferred_element_type=jnp.float32)
        y = y + bias_ref[...]
        if m["act"]:
            y = jnp.where(y >= 0, y, slope * y)            # LeakyReLU kept in f32 (v5e-safe)
        a = y

        if l == latent_idx:
            z_ref[0] = a                                   # latent z, (1, W*latent)

    # NOTE: at these toy sizes the (16, 8) output block is lane-sparse; acceptable today,
    # fold (H, W, C) into lanes if freq/time grow (see review item on lane density).
    xhat_ref[0] = a                                        # reconstruction, (H0, W*C0)


# ------------------------ constant folding (host, numpy) -----------------------
def bilinear_matrix(h_in, scale=2):
    """1-D PyTorch bilinear upsample matrix, align_corners=False: (scale*h_in, h_in)."""
    h_out = h_in * scale
    U = np.zeros((h_out, h_in), dtype=np.float32)
    for i in range(h_out):
        src = max((i + 0.5) / scale - 0.5, 0.0)
        i0 = min(int(np.floor(src)), h_in - 1)
        i1 = min(i0 + 1, h_in - 1)
        lam = src - i0
        U[i, i0] += 1.0 - lam
        U[i, i1] += lam
    return U


def _fold_bn(p):
    """Fold conv bias + eval-mode BatchNorm into scaled weights + one bias vector."""
    scale = np.asarray(p["gamma"]) / np.sqrt(np.asarray(p["rvar"]) + BN_EPS)
    bias = np.asarray(p["beta"]) + (np.asarray(p["b"]) - np.asarray(p["rmean"])) * scale
    w_scaled = np.asarray(p["w"]) * scale[None, None, None, :]
    return w_scaled.astype(np.float32), bias.astype(np.float32)


def _band_weight_cat(w_scaled, w_time):
    """(KH, KW, Cin, Cout) -> B_cat (KH*W*Cin, W*Cout): all KH taps stacked on the
    contraction axis, time (kw) taps laid out as a band, BN scale already folded in."""
    _, _, cin, cout = w_scaled.shape
    B = np.zeros((KH * w_time * cin, w_time * cout), dtype=np.float32)
    for kh in range(KH):
        for wo in range(w_time):
            for kw in range(KW):
                wi = wo + kw - PW
                if 0 <= wi < w_time:
                    r0 = (kh * w_time + wi) * cin
                    B[r0:r0 + cin, wo * cout:(wo + 1) * cout] = w_scaled[kh, kw]
    return B


def build_plan(params, freq, time):
    """Per-layer constants (bf16 weights, f32 bias) + static metadata for the kernel."""
    consts, meta = [], []
    H = freq
    for p in params["enc"]:
        cin, cout = p["w"].shape[2], p["w"].shape[3]
        Ho = (H + 2 * PH - KH) // 2 + 1
        w_scaled, bias = _fold_bn(p)
        consts.append((jnp.asarray(_band_weight_cat(w_scaled, time), jnp.bfloat16),
                       jnp.asarray(np.tile(bias, time)[None, :], jnp.float32)))
        meta.append(dict(kind="enc", h_in=H, h_out=Ho, wc_in=time * cin,
                         wc_out=time * cout, act=True, n_const=2))
        H = Ho
    n_dec = len(params["dec"])
    for jj, p in enumerate(params["dec"]):
        cin, cout = p["w"].shape[2], p["w"].shape[3]
        Hu = 2 * H
        Ho = Hu + 2 * PH - KH + 1                              # == Hu for (5,3)/(2,1)
        w_scaled, bias = _fold_bn(p)
        bcat = jnp.asarray(_band_weight_cat(w_scaled, time), jnp.bfloat16)
        brow = jnp.asarray(np.tile(bias, time)[None, :], jnp.float32)
        if H == 1:                                             # upsample of one row = dup
            layer_consts = (bcat, brow)
        else:                                                  # bilinear weights exact in bf16
            layer_consts = (jnp.asarray(bilinear_matrix(H), jnp.bfloat16), bcat, brow)
        consts.append(layer_consts)
        meta.append(dict(kind="dec", h_in=H, h_up=Hu, h_out=Ho, wc_in=time * cin,
                         wc_out=time * cout, act=(jj != n_dec - 1),
                         n_const=len(layer_consts)))
        H = Ho
    return consts, meta


# ---------------------------------- parameters ---------------------------------
def _conv_bn_params(key, cin, cout):
    k1, k2, k3, k4, k5, k6 = jax.random.split(key, 6)
    fan_in = cin * KH * KW
    bound = 1.0 / np.sqrt(fan_in)
    return {
        "w": jax.random.uniform(k1, (KH, KW, cin, cout), jnp.float32, -bound, bound),
        "b": jax.random.uniform(k2, (cout,), jnp.float32, -bound, bound),
        "gamma": jax.random.uniform(k3, (cout,), jnp.float32, 0.5, 1.5),
        "beta": jax.random.uniform(k4, (cout,), jnp.float32, -0.1, 0.1),
        "rmean": jax.random.uniform(k5, (cout,), jnp.float32, -0.1, 0.1),
        "rvar": jax.random.uniform(k6, (cout,), jnp.float32, 0.5, 1.5),
    }


def init_params(key, input_channels, hid_dim):
    n_block = len(hid_dim)
    keys = jax.random.split(key, 2 * n_block)
    enc, dec = [], []
    for ii in range(n_block):
        cin = input_channels if ii == 0 else hid_dim[ii - 1]
        enc.append(_conv_bn_params(keys[ii], cin, hid_dim[ii]))
    rev = list(reversed(hid_dim))
    for jj in range(n_block):
        cin = rev[jj]
        cout = input_channels if jj == n_block - 1 else rev[jj + 1]
        dec.append(_conv_bn_params(keys[n_block + jj], cin, cout))
    return {"enc": enc, "dec": dec}


# -------------------------------- fused forward --------------------------------
def make_forward(consts, meta, batch, input_channels, freq, time, hid_dim):
    n_layers = len(meta)
    n_enc = n_layers // 2
    latent = hid_dim[-1]
    h_lat = meta[n_enc - 1]["h_out"]
    h_out = meta[-1]["h_out"]
    wc0 = time * input_channels
    flat_consts = [c for layer in consts for c in layer]

    in_specs = [pl.BlockSpec((1, freq, wc0), lambda b: (b, 0, 0))]
    # weights/biases are batch-invariant: constant block index -> DMA'd once, reused
    in_specs += [pl.BlockSpec(c.shape, lambda b: (0, 0)) for c in flat_consts]
    out_specs = (pl.BlockSpec((1, h_out, wc0), lambda b: (b, 0, 0)),
                 pl.BlockSpec((1, h_lat, time * latent), lambda b: (b, 0, 0)))
    out_shape = (jax.ShapeDtypeStruct((batch, h_out, wc0), jnp.float32),
                 jax.ShapeDtypeStruct((batch, h_lat, time * latent), jnp.float32))

    # one small f32 scratch per layer holding the freq-zero-padded layer input
    scratch_shapes = [
        pltpu.VMEM(((m["h_in"] if m["kind"] == "enc" else m["h_up"]) + 2 * PH, m["wc_in"]),
                   jnp.float32)
        for m in meta
    ]

    fused = pl.pallas_call(
        partial(_fused_ae_kernel, meta=meta, latent_idx=n_enc - 1, slope=SLOPE),
        grid=(batch,),
        in_specs=in_specs,
        out_specs=out_specs,
        out_shape=out_shape,
        scratch_shapes=scratch_shapes,
        compiler_params=pltpu.CompilerParams(dimension_semantics=("parallel",)),
    )
    # TODO(synk): in a serving loop, prefetch the ~0.9 MiB bf16 weight constants across
    # calls (cross-call future pattern) instead of re-DMAing them each call.

    def forward(x_nchw):
        N, C, H, W = x_nchw.shape
        # NCHW -> per-batch conv layout (H, W*C): rows = freq, lanes = (time, channel)
        x3d = jnp.transpose(x_nchw, (0, 2, 3, 1)).reshape(N, H, W * C).astype(jnp.float32)
        xhat3d, z3d = fused(x3d, *flat_consts)
        x_hat = xhat3d.reshape(N, h_out, W, C).transpose(0, 3, 1, 2)        # NCHW
        z = z3d.reshape(N, h_lat, W, latent).transpose(0, 3, 1, 2)          # NCHW
        return x_hat, None, z

    return forward


# ------------------------------ pure-JAX reference -----------------------------
def reference_forward(x_nchw, params):
    """XLA reference: lax conv (HIGHEST precision) + eval BatchNorm + jax.image.resize
    bilinear upsample (independent of the host-built bilinear matrix in the kernel plan)."""
    def conv_bn(h, p, stride_h, use_act):
        w = jnp.transpose(p["w"], (3, 2, 0, 1))                     # OIHW
        y = lax.conv_general_dilated(h, w, window_strides=(stride_h, 1),
                                     padding=((PH, PH), (PW, PW)),
                                     dimension_numbers=("NCHW", "OIHW", "NCHW"),
                                     precision=lax.Precision.HIGHEST)
        y = y + p["b"][None, :, None, None]
        inv = 1.0 / jnp.sqrt(p["rvar"] + BN_EPS)
        y = (y - p["rmean"][None, :, None, None]) * (inv * p["gamma"])[None, :, None, None] \
            + p["beta"][None, :, None, None]
        if use_act:
            y = jnp.where(y >= 0, y, SLOPE * y)
        return y

    h = x_nchw
    for p in params["enc"]:
        h = conv_bn(h, p, 2, True)
    z = h
    n_dec = len(params["dec"])
    for jj, p in enumerate(params["dec"]):
        n, c, hh, ww = h.shape
        h = jax.image.resize(h, (n, c, 2 * hh, ww), method="bilinear")
        h = conv_bn(h, p, 1, jj != n_dec - 1)
    return h, None, z


# --------------------------------------- main ----------------------------------
if __name__ == "__main__":
    key = jax.random.PRNGKey(0)
    k_x, k_p = jax.random.split(key)

    batch, input_channels, freq, time = 2, 1, 16, 8
    hid_dim = [4, 8, 16, 32]

    x = jax.random.normal(k_x, (batch, input_channels, freq, time), dtype=jnp.float32)
    params = init_params(k_p, input_channels, hid_dim)

    # Independent check of the align_corners=False bilinear matrix used by the kernel plan
    # (jax.image.resize uses the same half-pixel-centers convention as F.interpolate with
    # align_corners=False for integer upsampling).
    for h in (1, 2, 4, 8):
        v = np.asarray(jax.random.normal(jax.random.PRNGKey(h), (h,), jnp.float32))
        got = bilinear_matrix(h) @ v
        want = np.asarray(jax.image.resize(jnp.asarray(v), (2 * h,), method="linear"))
        assert float(np.max(np.abs(got - want))) < 1e-5, (h, got, want)

    consts, meta = build_plan(params, freq, time)
    forward = make_forward(consts, meta, batch, input_channels, freq, time, hid_dim)

    fwd = jax.jit(forward)
    x_hat, z_att, z = fwd(x)
    jax.block_until_ready(x_hat)
    jax.block_until_ready(z)

    assert x_hat.shape == (batch, input_channels, freq, time)
    assert z.shape == (batch, hid_dim[-1], 1, time)
    assert z_att is None

    x_hat_r, _, z_r = reference_forward(x, params)
    err_x = float(jnp.max(jnp.abs(x_hat - x_hat_r)))
    err_z = float(jnp.max(jnp.abs(z - z_r)))
    # tolerance covers the explicit bf16 weight / activation operands (f32 accumulation)
    assert err_x < 3e-2 and err_z < 3e-2, (err_x, err_z)

    print("KERNEL_OK")
</pallas_src>

<mosaic_0001>
module attributes {stable_mosaic.version = 11 : i64} {
  func.func @_fused_ae_kernel(%arg0: i32, %arg1: memref<1x16x8xf32, #tpu.memory_space<vmem>>, %arg2: memref<40x32xbf16, #tpu.memory_space<vmem>>, %arg3: memref<1x32xf32, #tpu.memory_space<vmem>>, %arg4: memref<160x64xbf16, #tpu.memory_space<vmem>>, %arg5: memref<1x64xf32, #tpu.memory_space<vmem>>, %arg6: memref<320x128xbf16, #tpu.memory_space<vmem>>, %arg7: memref<1x128xf32, #tpu.memory_space<vmem>>, %arg8: memref<640x256xbf16, #tpu.memory_space<vmem>>, %arg9: memref<1x256xf32, #tpu.memory_space<vmem>>, %arg10: memref<1280x128xbf16, #tpu.memory_space<vmem>>, %arg11: memref<1x128xf32, #tpu.memory_space<vmem>>, %arg12: memref<4x2xbf16, #tpu.memory_space<vmem>>, %arg13: memref<640x64xbf16, #tpu.memory_space<vmem>>, %arg14: memref<1x64xf32, #tpu.memory_space<vmem>>, %arg15: memref<8x4xbf16, #tpu.memory_space<vmem>>, %arg16: memref<320x32xbf16, #tpu.memory_space<vmem>>, %arg17: memref<1x32xf32, #tpu.memory_space<vmem>>, %arg18: memref<16x8xbf16, #tpu.memory_space<vmem>>, %arg19: memref<160x8xbf16, #tpu.memory_space<vmem>>, %arg20: memref<1x8xf32, #tpu.memory_space<vmem>>, %arg21: memref<1x16x8xf32, #tpu.memory_space<vmem>>, %arg22: memref<1x1x256xf32, #tpu.memory_space<vmem>>, %arg23: memref<20x8xf32, #tpu.memory_space<vmem>>, %arg24: memref<12x32xf32, #tpu.memory_space<vmem>>, %arg25: memref<8x64xf32, #tpu.memory_space<vmem>>, %arg26: memref<6x128xf32, #tpu.memory_space<vmem>>, %arg27: memref<6x256xf32, #tpu.memory_space<vmem>>, %arg28: memref<8x128xf32, #tpu.memory_space<vmem>>, %arg29: memref<12x64xf32, #tpu.memory_space<vmem>>, %arg30: memref<20x32xf32, #tpu.memory_space<vmem>>) attributes {dimension_semantics = [#tpu.dimension_semantics<parallel>], iteration_bounds = array<i64: 2>, scalar_prefetch = 0 : i64, scratch_operands = 8 : i64, tpu.core_type = #tpu.core_type<tc>, window_params = [{transform_indices = @transform_0, window_bounds = array<i64: 1, 16, 8>}, {pipeline_mode = #tpu.pipeline_mode<synchronous>, transform_indices = @transform_1, window_bounds = array<i64: 40, 32>}, {pipeline_mode = #tpu.pipeline_mode<synchronous>, transform_indices = @transform_2, window_bounds = array<i64: 1, 32>}, {pipeline_mode = #tpu.pipeline_mode<synchronous>, transform_indices = @transform_3, window_bounds = array<i64: 160, 64>}, {pipeline_mode = #tpu.pipeline_mode<synchronous>, transform_indices = @transform_4, window_bounds = array<i64: 1, 64>}, {pipeline_mode = #tpu.pipeline_mode<synchronous>, transform_indices = @transform_5, window_bounds = array<i64: 320, 128>}, {pipeline_mode = #tpu.pipeline_mode<synchronous>, transform_indices = @transform_6, window_bounds = array<i64: 1, 128>}, {pipeline_mode = #tpu.pipeline_mode<synchronous>, transform_indices = @transform_7, window_bounds = array<i64: 640, 256>}, {pipeline_mode = #tpu.pipeline_mode<synchronous>, transform_indices = @transform_8, window_bounds = array<i64: 1, 256>}, {pipeline_mode = #tpu.pipeline_mode<synchronous>, transform_indices = @transform_9, window_bounds = array<i64: 1280, 128>}, {pipeline_mode = #tpu.pipeline_mode<synchronous>, transform_indices = @transform_10, window_bounds = array<i64: 1, 128>}, {pipeline_mode = #tpu.pipeline_mode<synchronous>, transform_indices = @transform_11, window_bounds = array<i64: 4, 2>}, {pipeline_mode = #tpu.pipeline_mode<synchronous>, transform_indices = @transform_12, window_bounds = array<i64: 640, 64>}, {pipeline_mode = #tpu.pipeline_mode<synchronous>, transform_indices = @transform_13, window_bounds = array<i64: 1, 64>}, {pipeline_mode = #tpu.pipeline_mode<synchronous>, transform_indices = @transform_14, window_bounds = array<i64: 8, 4>}, {pipeline_mode = #tpu.pipeline_mode<synchronous>, transform_indices = @transform_15, window_bounds = array<i64: 320, 32>}, {pipeline_mode = #tpu.pipeline_mode<synchronous>, transform_indices = @transform_16, window_bounds = array<i64: 1, 32>}, {pipeline_mode = #tpu.pipeline_mode<synchronous>, transform_indices = @transform_17, window_bounds = array<i64: 16, 8>}, {pipeline_mode = #tpu.pipeline_mode<synchronous>, transform_indices = @transform_18, window_bounds = array<i64: 160, 8>}, {pipeline_mode = #tpu.pipeline_mode<synchronous>, transform_indices = @transform_19, window_bounds = array<i64: 1, 8>}, {transform_indices = @transform_20, window_bounds = array<i64: 1, 16, 8>}, {transform_indices = @transform_21, window_bounds = array<i64: 1, 1, 256>}]} {
    %c0 = arith.constant 0 : index
    %c0_0 = arith.constant 0 : index
    %c0_1 = arith.constant 0 : index
    %0 = vector.load %arg1[%c0, %c0_0, %c0_1] : memref<1x16x8xf32, #tpu.memory_space<vmem>>, vector<1x16x8xf32>
    %1 = vector.shape_cast %0 : vector<1x16x8xf32> to vector<16x8xf32>
    %cst = arith.constant 0.000000e+00 : f32
    %2 = vector.broadcast %cst : f32 to vector<2x8xf32>
    %c0_2 = arith.constant 0 : index
    %c0_3 = arith.constant 0 : index
    %3 = vector.load %arg23[%c0_2, %c0_3] : memref<20x8xf32, #tpu.memory_space<vmem>>, vector<2x8xf32>
    tpu.vector_store %arg23[%c0_2, %c0_3], %2 {strides = array<i32>} : memref<20x8xf32, #tpu.memory_space<vmem>>, vector<2x8xf32>,
    %c2 = arith.constant 2 : index
    %c0_4 = arith.constant 0 : index
    %4 = vector.load %arg23[%c2, %c0_4] : memref<20x8xf32, #tpu.memory_space<vmem>>, vector<16x8xf32>
    tpu.vector_store %arg23[%c2, %c0_4], %1 {strides = array<i32>} : memref<20x8xf32, #tpu.memory_space<vmem>>, vector<16x8xf32>,
    %c18 = arith.constant 18 : index
    %c0_5 = arith.constant 0 : index
    %5 = vector.load %arg23[%c18, %c0_5] : memref<20x8xf32, #tpu.memory_space<vmem>>, vector<2x8xf32>
    tpu.vector_store %arg23[%c18, %c0_5], %2 {strides = array<i32>} : memref<20x8xf32, #tpu.memory_space<vmem>>, vector<2x8xf32>,
    %c0_6 = arith.constant 0 : index
    %c0_7 = arith.constant 0 : index
    %6 = tpu.strided_load %arg23[%c0_6, %c0_7] {strides = array<i32: 2, 1>} : memref<20x8xf32, #tpu.memory_space<vmem>>, vector<8x8xf32>
    %c1 = arith.constant 1 : index
    %c0_8 = arith.constant 0 : index
    %7 = tpu.strided_load %arg23[%c1, %c0_8] {strides = array<i32: 2, 1>} : memref<20x8xf32, #tpu.memory_space<vmem>>, vector<8x8xf32>
    %c2_9 = arith.constant 2 : index
    %c0_10 = arith.constant 0 : index
    %8 = tpu.strided_load %arg23[%c2_9, %c0_10] {strides = array<i32: 2, 1>} : memref<20x8xf32, #tpu.memory_space<vmem>>, vector<8x8xf32>
    %c3 = arith.constant 3 : index
    %c0_11 = arith.constant 0 : index
    %9 = tpu.strided_load %arg23[%c3, %c0_11] {strides = array<i32: 2, 1>} : memref<20x8xf32, #tpu.memory_space<vmem>>, vector<8x8xf32>
    %c4 = arith.constant 4 : index
    %c0_12 = arith.constant 0 : index
    %10 = tpu.strided_load %arg23[%c4, %c0_12] {strides = array<i32: 2, 1>} : memref<20x8xf32, #tpu.memory_space<vmem>>, vector<8x8xf32>
    %11 = tpu.concatenate %6, %7, %8, %9, %10 in 1 : vector<8x8xf32>, vector<8x8xf32>, vector<8x8xf32>, vector<8x8xf32>, vector<8x8xf32> -> vector<8x40xf32>
    %12 = arith.truncf %11 : vector<8x40xf32> to vector<8x40xbf16>
    %c0_13 = arith.constant 0 : index
    %c0_14 = arith.constant 0 : index
    %13 = vector.load %arg2[%c0_13, %c0_14] : memref<40x32xbf16, #tpu.memory_space<vmem>>, vector<40x32xbf16>
    %cst_15 = arith.constant dense<0.000000e+00> : vector<8x32xf32>
    %14 = tpu.matmul %12, %13, %cst_15 {dimension_numbers = #tpu.dot_dimension_numbers<[1], [0], [0], [1], [0, 0, 1, 1], [], []>} : vector<8x40xbf16>, vector<40x32xbf16>, vector<8x32xf32> -> vector<8x32xf32>
    %c0_16 = arith.constant 0 : index
    %c0_17 = arith.constant 0 : index
    %15 = vector.load %arg3[%c0_16, %c0_17] : memref<1x32xf32, #tpu.memory_space<vmem>>, vector<1x32xf32>
    %16 = vector.broadcast %15 : vector<1x32xf32> to vector<8x32xf32>
    %17 = arith.addf %14, %16 : vector<8x32xf32>
    %cst_18 = arith.constant 0.000000e+00 : f32
    %18 = vector.broadcast %cst_18 : f32 to vector<8x32xf32>
    %19 = arith.cmpf oge, %17, %18 : vector<8x32xf32>
    %cst_19 = arith.constant 2.000000e-01 : f32
    %20 = vector.broadcast %cst_19 : f32 to vector<8x32xf32>
    %21 = arith.mulf %20, %17 : vector<8x32xf32>
    %22 = arith.select %19, %17, %21 : vector<8x32xi1>, vector<8x32xf32>
    %cst_20 = arith.constant 0.000000e+00 : f32
    %23 = vector.broadcast %cst_20 : f32 to vector<2x32xf32>
    %c0_21 = arith.constant 0 : index
    %c0_22 = arith.constant 0 : index
    %24 = vector.load %arg24[%c0_21, %c0_22] : memref<12x32xf32, #tpu.memory_space<vmem>>, vector<2x32xf32>
    tpu.vector_store %arg24[%c0_21, %c0_22], %23 {strides = array<i32>} : memref<12x32xf32, #tpu.memory_space<vmem>>, vector<2x32xf32>,
    %c2_23 = arith.constant 2 : index
    %c0_24 = arith.constant 0 : index
    %25 = vector.load %arg24[%c2_23, %c0_24] : memref<12x32xf32, #tpu.memory_space<vmem>>, vector<8x32xf32>
    tpu.vector_store %arg24[%c2_23, %c0_24], %22 {strides = array<i32>} : memref<12x32xf32, #tpu.memory_space<vmem>>, vector<8x32xf32>,
    %c10 = arith.constant 10 : index
    %c0_25 = arith.constant 0 : index
    %26 = vector.load %arg24[%c10, %c0_25] : memref<12x32xf32, #tpu.memory_space<vmem>>, vector<2x32xf32>
    tpu.vector_store %arg24[%c10, %c0_25], %23 {strides = array<i32>} : memref<12x32xf32, #tpu.memory_space<vmem>>, vector<2x32xf32>,
    %c0_26 = arith.constant 0 : index
    %c0_27 = arith.constant 0 : index
    %27 = tpu.strided_load %arg24[%c0_26, %c0_27] {strides = array<i32: 2, 1>} : memref<12x32xf32, #tpu.memory_space<vmem>>, vector<4x32xf32>
    %c1_28 = arith.constant 1 : index
    %c0_29 = arith.constant 0 : index
    %28 = tpu.strided_load %arg24[%c1_28, %c0_29] {strides = array<i32: 2, 1>} : memref<12x32xf32, #tpu.memory_space<vmem>>, vector<4x32xf32>
    %c2_30 = arith.constant 2 : index
    %c0_31 = arith.constant 0 : index
    %29 = tpu.strided_load %arg24[%c2_30, %c0_31] {strides = array<i32: 2, 1>} : memref<12x32xf32, #tpu.memory_space<vmem>>, vector<4x32xf32>
    %c3_32 = arith.constant 3 : index
    %c0_33 = arith.constant 0 : index
    %30 = tpu.strided_load %arg24[%c3_32, %c0_33] {strides = array<i32: 2, 1>} : memref<12x32xf32, #tpu.memory_space<vmem>>, vector<4x32xf32>
    %c4_34 = arith.constant 4 : index
    %c0_35 = arith.constant 0 : index
    %31 = tpu.strided_load %arg24[%c4_34, %c0_35] {strides = array<i32: 2, 1>} : memref<12x32xf32, #tpu.memory_space<vmem>>, vector<4x32xf32>
    %32 = tpu.concatenate %27, %28, %29, %30, %31 in 1 : vector<4x32xf32>, vector<4x32xf32>, vector<4x32xf32>, vector<4x32xf32>, vector<4x32xf32> -> vector<4x160xf32>
    %33 = arith.truncf %32 : vector<4x160xf32> to vector<4x160xbf16>
    %c0_36 = arith.constant 0 : index
    %c0_37 = arith.constant 0 : index
    %34 = vector.load %arg4[%c0_36, %c0_37] : memref<160x64xbf16, #tpu.memory_space<vmem>>, vector<160x64xbf16>
    %cst_38 = arith.constant dense<0.000000e+00> : vector<4x64xf32>
    %35 = tpu.matmul %33, %34, %cst_38 {dimension_numbers = #tpu.dot_dimension_numbers<[1], [0], [0], [1], [0, 0, 1, 1], [], []>} : vector<4x160xbf16>, vector<160x64xbf16>, vector<4x64xf32> -> vector<4x64xf32>
    %c0_39 = arith.constant 0 : index
    %c0_40 = arith.constant 0 : index
    %36 = vector.load %arg5[%c0_39, %c0_40] : memref<1x64xf32, #tpu.memory_space<vmem>>, vector<1x64xf32>
    %37 = vector.broadcast %36 : vector<1x64xf32> to vector<4x64xf32>
    %38 = arith.addf %35, %37 : vector<4x64xf32>
    %cst_41 = arith.constant 0.000000e+00 : f32
    %39 = vector.broadcast %cst_41 : f32 to vector<4x64xf32>
    %40 = arith.cmpf oge, %38, %39 : vector<4x64xf32>
    %cst_42 = arith.constant 2.000000e-01 : f32
    %41 = vector.broadcast %cst_42 : f32 to vector<4x64xf32>
    %42 = arith.mulf %41, %38 : vector<4x64xf32>
    %43 = arith.select %40, %38, %42 : vector<4x64xi1>, vector<4x64xf32>
    %cst_43 = arith.constant 0.000000e+00 : f32
    %44 = vector.broadcast %cst_43 : f32 to vector<2x64xf32>
    %c0_44 = arith.constant 0 : index
    %c0_45 = arith.constant 0 : index
    %45 = vector.load %arg25[%c0_44, %c0_45] : memref<8x64xf32, #tpu.memory_space<vmem>>, vector<2x64xf32>
    tpu.vector_store %arg25[%c0_44, %c0_45], %44 {strides = array<i32>} : memref<8x64xf32, #tpu.memory_space<vmem>>, vector<2x64xf32>,
    %c2_46 = arith.constant 2 : index
    %c0_47 = arith.constant 0 : index
    %46 = vector.load %arg25[%c2_46, %c0_47] : memref<8x64xf32, #tpu.memory_space<vmem>>, vector<4x64xf32>
    tpu.vector_store %arg25[%c2_46, %c0_47], %43 {strides = array<i32>} : memref<8x64xf32, #tpu.memory_space<vmem>>, vector<4x64xf32>,
    %c6 = arith.constant 6 : index
    %c0_48 = arith.constant 0 : index
    %47 = vector.load %arg25[%c6, %c0_48] : memref<8x64xf32, #tpu.memory_space<vmem>>, vector<2x64xf32>
    tpu.vector_store %arg25[%c6, %c0_48], %44 {strides = array<i32>} : memref<8x64xf32, #tpu.memory_space<vmem>>, vector<2x64xf32>,
    %c0_49 = arith.constant 0 : index
    %c0_50 = arith.constant 0 : index
    %48 = tpu.strided_load %arg25[%c0_49, %c0_50] {strides = array<i32: 2, 1>} : memref<8x64xf32, #tpu.memory_space<vmem>>, vector<2x64xf32>
    %c1_51 = arith.constant 1 : index
    %c0_52 = arith.constant 0 : index
    %49 = tpu.strided_load %arg25[%c1_51, %c0_52] {strides = array<i32: 2, 1>} : memref<8x64xf32, #tpu.memory_space<vmem>>, vector<2x64xf32>
    %c2_53 = arith.constant 2 : index
    %c0_54 = arith.constant 0 : index
    %50 = tpu.strided_load %arg25[%c2_53, %c0_54] {strides = array<i32: 2, 1>} : memref<8x64xf32, #tpu.memory_space<vmem>>, vector<2x64xf32>
    %c3_55 = arith.constant 3 : index
    %c0_56 = arith.constant 0 : index
    %51 = tpu.strided_load %arg25[%c3_55, %c0_56] {strides = array<i32: 2, 1>} : memref<8x64xf32, #tpu.memory_space<vmem>>, vector<2x64xf32>
    %c4_57 = arith.constant 4 : index
    %c0_58 = arith.constant 0 : index
    %52 = tpu.strided_load %arg25[%c4_57, %c0_58] {strides = array<i32: 2, 1>} : memref<8x64xf32, #tpu.memory_space<vmem>>, vector<2x64xf32>
    %53 = tpu.concatenate %48, %49, %50, %51, %52 in 1 : vector<2x64xf32>, vector<2x64xf32>, vector<2x64xf32>, vector<2x64xf32>, vector<2x64xf32> -> vector<2x320xf32>
    %54 = arith.truncf %53 : vector<2x320xf32> to vector<2x320xbf16>
    %c0_59 = arith.constant 0 : index
    %c0_60 = arith.constant 0 : index
    %55 = vector.load %arg6[%c0_59, %c0_60] : memref<320x128xbf16, #tpu.memory_space<vmem>>, vector<320x128xbf16>
    %cst_61 = arith.constant dense<0.000000e+00> : vector<2x128xf32>
    %56 = tpu.matmul %54, %55, %cst_61 {dimension_numbers = #tpu.dot_dimension_numbers<[1], [0], [0], [1], [0, 0, 1, 1], [], []>} : vector<2x320xbf16>, vector<320x128xbf16>, vector<2x128xf32> -> vector<2x128xf32>
    %c0_62 = arith.constant 0 : index
    %c0_63 = arith.constant 0 : index
    %57 = vector.load %arg7[%c0_62, %c0_63] : memref<1x128xf32, #tpu.memory_space<vmem>>, vector<1x128xf32>
    %58 = vector.broadcast %57 : vector<1x128xf32> to vector<2x128xf32>
    %59 = arith.addf %56, %58 : vector<2x128xf32>
    %cst_64 = arith.constant 0.000000e+00 : f32
    %60 = vector.broadcast %cst_64 : f32 to vector<2x128xf32>
    %61 = arith.cmpf oge, %59, %60 : vector<2x128xf32>
    %cst_65 = arith.constant 2.000000e-01 : f32
    %62 = vector.broadcast %cst_65 : f32 to vector<2x128xf32>
    %63 = arith.mulf %62, %59 : vector<2x128xf32>
    %64 = arith.select %61, %59, %63 : vector<2x128xi1>, vector<2x128xf32>
    %cst_66 = arith.constant 0.000000e+00 : f32
    %65 = vector.broadcast %cst_66 : f32 to vector<2x128xf32>
    %c0_67 = arith.constant 0 : index
    %c0_68 = arith.constant 0 : index
    %66 = vector.load %arg26[%c0_67, %c0_68] : memref<6x128xf32, #tpu.memory_space<vmem>>, vector<2x128xf32>
    tpu.vector_store %arg26[%c0_67, %c0_68], %65 {strides = array<i32>} : memref<6x128xf32, #tpu.memory_space<vmem>>, vector<2x128xf32>,
    %c2_69 = arith.constant 2 : index
    %c0_70 = arith.constant 0 : index
    %67 = vector.load %arg26[%c2_69, %c0_70] : memref<6x128xf32, #tpu.memory_space<vmem>>, vector<2x128xf32>
    tpu.vector_store %arg26[%c2_69, %c0_70], %64 {strides = array<i32>} : memref<6x128xf32, #tpu.memory_space<vmem>>, vector<2x128xf32>,
    %c4_71 = arith.constant 4 : index
    %c0_72 = arith.constant 0 : index
    %68 = vector.load %arg26[%c4_71, %c0_72] : memref<6x128xf32, #tpu.memory_space<vmem>>, vector<2x128xf32>
    tpu.vector_store %arg26[%c4_71, %c0_72], %65 {strides = array<i32>} : memref<6x128xf32, #tpu.memory_space<vmem>>, vector<2x128xf32>,
    %c0_73 = arith.constant 0 : index
    %c0_74 = arith.constant 0 : index
    %69 = tpu.strided_load %arg26[%c0_73, %c0_74] {strides = array<i32: 2, 1>} : memref<6x128xf32, #tpu.memory_space<vmem>>, vector<1x128xf32>
    %c1_75 = arith.constant 1 : index
    %c0_76 = arith.constant 0 : index
    %70 = tpu.strided_load %arg26[%c1_75, %c0_76] {strides = array<i32: 2, 1>} : memref<6x128xf32, #tpu.memory_space<vmem>>, vector<1x128xf32>
    %c2_77 = arith.constant 2 : index
    %c0_78 = arith.constant 0 : index
    %71 = tpu.strided_load %arg26[%c2_77, %c0_78] {strides = array<i32: 2, 1>} : memref<6x128xf32, #tpu.memory_space<vmem>>, vector<1x128xf32>
    %c3_79 = arith.constant 3 : index
    %c0_80 = arith.constant 0 : index
    %72 = tpu.strided_load %arg26[%c3_79, %c0_80] {strides = array<i32: 2, 1>} : memref<6x128xf32, #tpu.memory_space<vmem>>, vector<1x128xf32>
    %c4_81 = arith.constant 4 : index
    %c0_82 = arith.constant 0 : index
    %73 = tpu.strided_load %arg26[%c4_81, %c0_82] {strides = array<i32: 2, 1>} : memref<6x128xf32, #tpu.memory_space<vmem>>, vector<1x128xf32>
    %74 = tpu.concatenate %69, %70, %71, %72, %73 in 1 : vector<1x128xf32>, vector<1x128xf32>, vector<1x128xf32>, vector<1x128xf32>, vector<1x128xf32> -> vector<1x640xf32>
    %75 = arith.truncf %74 : vector<1x640xf32> to vector<1x640xbf16>
    %c0_83 = arith.constant 0 : index
    %c0_84 = arith.constant 0 : index
    %76 = vector.load %arg8[%c0_83, %c0_84] : memref<640x256xbf16, #tpu.memory_space<vmem>>, vector<640x256xbf16>
    %cst_85 = arith.constant dense<0.000000e+00> : vector<1x256xf32>
    %77 = tpu.matmul %75, %76, %cst_85 {dimension_numbers = #tpu.dot_dimension_numbers<[1], [0], [0], [1], [0, 0, 1, 1], [], []>} : vector<1x640xbf16>, vector<640x256xbf16>, vector<1x256xf32> -> vector<1x256xf32>
    %c0_86 = arith.constant 0 : index
    %c0_87 = arith.constant 0 : index
    %78 = vector.load %arg9[%c0_86, %c0_87] : memref<1x256xf32, #tpu.memory_space<vmem>>, vector<1x256xf32>
    %79 = arith.addf %77, %78 : vector<1x256xf32>
    %cst_88 = arith.constant 0.000000e+00 : f32
    %80 = vector.broadcast %cst_88 : f32 to vector<1x256xf32>
    %81 = arith.cmpf oge, %79, %80 : vector<1x256xf32>
    %cst_89 = arith.constant 2.000000e-01 : f32
    %82 = vector.broadcast %cst_89 : f32 to vector<1x256xf32>
    %83 = arith.mulf %82, %79 : vector<1x256xf32>
    %84 = arith.select %81, %79, %83 : vector<1x256xi1>, vector<1x256xf32>
    %c0_90 = arith.constant 0 : index
    %c0_91 = arith.constant 0 : index
    %c0_92 = arith.constant 0 : index
    %85 = vector.load %arg22[%c0_90, %c0_91, %c0_92] : memref<1x1x256xf32, #tpu.memory_space<vmem>>, vector<1x1x256xf32>
    %86 = vector.shape_cast %85 : vector<1x1x256xf32> to vector<1x256xf32>
    %87 = vector.shape_cast %84 : vector<1x256xf32> to vector<1x1x256xf32>
    tpu.vector_store %arg22[%c0_90, %c0_91, %c0_92], %87 {strides = array<i32>} : memref<1x1x256xf32, #tpu.memory_space<vmem>>, vector<1x1x256xf32>,
    %88 = tpu.concatenate %84, %84 in 0 : vector<1x256xf32>, vector<1x256xf32> -> vector<2x256xf32>
    %cst_93 = arith.constant 0.000000e+00 : f32
    %89 = vector.broadcast %cst_93 : f32 to vector<2x256xf32>
    %c0_94 = arith.constant 0 : index
    %c0_95 = arith.constant 0 : index
    %90 = vector.load %arg27[%c0_94, %c0_95] : memref<6x256xf32, #tpu.memory_space<vmem>>, vector<2x256xf32>
    tpu.vector_store %arg27[%c0_94, %c0_95], %89 {strides = array<i32>} : memref<6x256xf32, #tpu.memory_space<vmem>>, vector<2x256xf32>,
    %c2_96 = arith.constant 2 : index
    %c0_97 = arith.constant 0 : index
    %91 = vector.load %arg27[%c2_96, %c0_97] : memref<6x256xf32, #tpu.memory_space<vmem>>, vector<2x256xf32>
    tpu.vector_store %arg27[%c2_96, %c0_97], %88 {strides = array<i32>} : memref<6x256xf32, #tpu.memory_space<vmem>>, vector<2x256xf32>,
    %c4_98 = arith.constant 4 : index
    %c0_99 = arith.constant 0 : index
    %92 = vector.load %arg27[%c4_98, %c0_99] : memref<6x256xf32, #tpu.memory_space<vmem>>, vector<2x256xf32>
    tpu.vector_store %arg27[%c4_98, %c0_99], %89 {strides = array<i32>} : memref<6x256xf32, #tpu.memory_space<vmem>>, vector<2x256xf32>,
    %c0_100 = arith.constant 0 : index
    %c0_101 = arith.constant 0 : index
    %93 = vector.load %arg27[%c0_100, %c0_101] : memref<6x256xf32, #tpu.memory_space<vmem>>, vector<2x256xf32>
    %c1_102 = arith.constant 1 : index
    %c0_103 = arith.constant 0 : index
    %94 = vector.load %arg27[%c1_102, %c0_103] : memref<6x256xf32, #tpu.memory_space<vmem>>, vector<2x256xf32>
    %c2_104 = arith.constant 2 : index
    %c0_105 = arith.constant 0 : index
    %95 = vector.load %arg27[%c2_104, %c0_105] : memref<6x256xf32, #tpu.memory_space<vmem>>, vector<2x256xf32>
    %c3_106 = arith.constant 3 : index
    %c0_107 = arith.constant 0 : index
    %96 = vector.load %arg27[%c3_106, %c0_107] : memref<6x256xf32, #tpu.memory_space<vmem>>, vector<2x256xf32>
    %c4_108 = arith.constant 4 : index
    %c0_109 = arith.constant 0 : index
    %97 = vector.load %arg27[%c4_108, %c0_109] : memref<6x256xf32, #tpu.memory_space<vmem>>, vector<2x256xf32>
    %98 = tpu.concatenate %93, %94, %95, %96, %97 in 1 : vector<2x256xf32>, vector<2x256xf32>, vector<2x256xf32>, vector<2x256xf32>, vector<2x256xf32> -> vector<2x1280xf32>
    %99 = arith.truncf %98 : vector<2x1280xf32> to vector<2x1280xbf16>
    %c0_110 = arith.constant 0 : index
    %c0_111 = arith.constant 0 : index
    %100 = vector.load %arg10[%c0_110, %c0_111] : memref<1280x128xbf16, #tpu.memory_space<vmem>>, vector<1280x128xbf16>
    %cst_112 = arith.constant dense<0.000000e+00> : vector<2x128xf32>
    %101 = tpu.matmul %99, %100, %cst_112 {dimension_numbers = #tpu.dot_dimension_numbers<[1], [0], [0], [1], [0, 0, 1, 1], [], []>} : vector<2x1280xbf16>, vector<1280x128xbf16>, vector<2x128xf32> -> vector<2x128xf32>
    %c0_113 = arith.constant 0 : index
    %c0_114 = arith.constant 0 : index
    %102 = vector.load %arg11[%c0_113, %c0_114] : memref<1x128xf32, #tpu.memory_space<vmem>>, vector<1x128xf32>
    %103 = vector.broadcast %102 : vector<1x128xf32> to vector<2x128xf32>
    %104 = arith.addf %101, %103 : vector<2x128xf32>
    %cst_115 = arith.constant 0.000000e+00 : f32
    %105 = vector.broadcast %cst_115 : f32 to vector<2x128xf32>
    %106 = arith.cmpf oge, %104, %105 : vector<2x128xf32>
    %cst_116 = arith.constant 2.000000e-01 : f32
    %107 = vector.broadcast %cst_116 : f32 to vector<2x128xf32>
    %108 = arith.mulf %107, %104 : vector<2x128xf32>
    %109 = arith.select %106, %104, %108 : vector<2x128xi1>, vector<2x128xf32>
    %c0_117 = arith.constant 0 : index
    %c0_118 = arith.constant 0 : index
    %110 = vector.load %arg12[%c0_117, %c0_118] : memref<4x2xbf16, #tpu.memory_space<vmem>>, vector<4x2xbf16>
    %111 = arith.truncf %109 : vector<2x128xf32> to vector<2x128xbf16>
    %cst_119 = arith.constant dense<0.000000e+00> : vector<4x128xf32>
    %112 = tpu.matmul %110, %111, %cst_119 {dimension_numbers = #tpu.dot_dimension_numbers<[1], [0], [0], [1], [0, 0, 1, 1], [], []>} : vector<4x2xbf16>, vector<2x128xbf16>, vector<4x128xf32> -> vector<4x128xf32>
    %cst_120 = arith.constant 0.000000e+00 : f32
    %113 = vector.broadcast %cst_120 : f32 to vector<2x128xf32>
    %c0_121 = arith.constant 0 : index
    %c0_122 = arith.constant 0 : index
    %114 = vector.load %arg28[%c0_121, %c0_122] : memref<8x128xf32, #tpu.memory_space<vmem>>, vector<2x128xf32>
    tpu.vector_store %arg28[%c0_121, %c0_122], %113 {strides = array<i32>} : memref<8x128xf32, #tpu.memory_space<vmem>>, vector<2x128xf32>,
    %c2_123 = arith.constant 2 : index
    %c0_124 = arith.constant 0 : index
    %115 = vector.load %arg28[%c2_123, %c0_124] : memref<8x128xf32, #tpu.memory_space<vmem>>, vector<4x128xf32>
    tpu.vector_store %arg28[%c2_123, %c0_124], %112 {strides = array<i32>} : memref<8x128xf32, #tpu.memory_space<vmem>>, vector<4x128xf32>,
    %c6_125 = arith.constant 6 : index
    %c0_126 = arith.constant 0 : index
    %116 = vector.load %arg28[%c6_125, %c0_126] : memref<8x128xf32, #tpu.memory_space<vmem>>, vector<2x128xf32>
    tpu.vector_store %arg28[%c6_125, %c0_126], %113 {strides = array<i32>} : memref<8x128xf32, #tpu.memory_space<vmem>>, vector<2x128xf32>,
    %c0_127 = arith.constant 0 : index
    %c0_128 = arith.constant 0 : index
    %117 = vector.load %arg28[%c0_127, %c0_128] : memref<8x128xf32, #tpu.memory_space<vmem>>, vector<4x128xf32>
    %c1_129 = arith.constant 1 : index
    %c0_130 = arith.constant 0 : index
    %118 = vector.load %arg28[%c1_129, %c0_130] : memref<8x128xf32, #tpu.memory_space<vmem>>, vector<4x128xf32>
    %c2_131 = arith.constant 2 : index
    %c0_132 = arith.constant 0 : index
    %119 = vector.load %arg28[%c2_131, %c0_132] : memref<8x128xf32, #tpu.memory_space<vmem>>, vector<4x128xf32>
    %c3_133 = arith.constant 3 : index
    %c0_134 = arith.constant 0 : index
    %120 = vector.load %arg28[%c3_133, %c0_134] : memref<8x128xf32, #tpu.memory_space<vmem>>, vector<4x128xf32>
    %c4_135 = arith.constant 4 : index
    %c0_136 = arith.constant 0 : index
    %121 = vector.load %arg28[%c4_135, %c0_136] : memref<8x128xf32, #tpu.memory_space<vmem>>, vector<4x128xf32>
    %122 = tpu.concatenate %117, %118, %119, %120, %121 in 1 : vector<4x128xf32>, vector<4x128xf32>, vector<4x128xf32>, vector<4x128xf32>, vector<4x128xf32> -> vector<4x640xf32>
    %123 = arith.truncf %122 : vector<4x640xf32> to vector<4x640xbf16>
    %c0_137 = arith.constant 0 : index
    %c0_138 = arith.constant 0 : index
    %124 = vector.load %arg13[%c0_137, %c0_138] : memref<640x64xbf16, #tpu.memory_space<vmem>>, vector<640x64xbf16>
    %cst_139 = arith.constant dense<0.000000e+00> : vector<4x64xf32>
    %125 = tpu.matmul %123, %124, %cst_139 {dimension_numbers = #tpu.dot_dimension_numbers<[1], [0], [0], [1], [0, 0, 1, 1], [], []>} : vector<4x640xbf16>, vector<640x64xbf16>, vector<4x64xf32> -> vector<4x64xf32>
    %c0_140 = arith.constant 0 : index
    %c0_141 = arith.constant 0 : index
    %126 = vector.load %arg14[%c0_140, %c0_141] : memref<1x64xf32, #tpu.memory_space<vmem>>, vector<1x64xf32>
    %127 = vector.broadcast %126 : vector<1x64xf32> to vector<4x64xf32>
    %128 = arith.addf %125, %127 : vector<4x64xf32>
    %cst_142 = arith.constant 0.000000e+00 : f32
    %129 = vector.broadcast %cst_142 : f32 to vector<4x64xf32>
    %130 = arith.cmpf oge, %128, %129 : vector<4x64xf32>
    %cst_143 = arith.constant 2.000000e-01 : f32
    %131 = vector.broadcast %cst_143 : f32 to vector<4x64xf32>
    %132 = arith.mulf %131, %128 : vector<4x64xf32>
    %133 = arith.select %130, %128, %132 : vector<4x64xi1>, vector<4x64xf32>
    %c0_144 = arith.constant 0 : index
    %c0_145 = arith.constant 0 : index
    %134 = vector.load %arg15[%c0_144, %c0_145] : memref<8x4xbf16, #tpu.memory_space<vmem>>, vector<8x4xbf16>
    %135 = arith.truncf %133 : vector<4x64xf32> to vector<4x64xbf16>
    %cst_146 = arith.constant dense<0.000000e+00> : vector<8x64xf32>
    %136 = tpu.matmul %134, %135, %cst_146 {dimension_numbers = #tpu.dot_dimension_numbers<[1], [0], [0], [1], [0, 0, 1, 1], [], []>} : vector<8x4xbf16>, vector<4x64xbf16>, vector<8x64xf32> -> vector<8x64xf32>
    %cst_147 = arith.constant 0.000000e+00 : f32
    %137 = vector.broadcast %cst_147 : f32 to vector<2x64xf32>
    %c0_148 = arith.constant 0 : index
    %c0_149 = arith.constant 0 : index
    %138 = vector.load %arg29[%c0_148, %c0_149] : memref<12x64xf32, #tpu.memory_space<vmem>>, vector<2x64xf32>
    tpu.vector_store %arg29[%c0_148, %c0_149], %137 {strides = array<i32>} : memref<12x64xf32, #tpu.memory_space<vmem>>, vector<2x64xf32>,
    %c2_150 = arith.constant 2 : index
    %c0_151 = arith.constant 0 : index
    %139 = vector.load %arg29[%c2_150, %c0_151] : memref<12x64xf32, #tpu.memory_space<vmem>>, vector<8x64xf32>
    tpu.vector_store %arg29[%c2_150, %c0_151], %136 {strides = array<i32>} : memref<12x64xf32, #tpu.memory_space<vmem>>, vector<8x64xf32>,
    %c10_152 = arith.constant 10 : index
    %c0_153 = arith.constant 0 : index
    %140 = vector.load %arg29[%c10_152, %c0_153] : memref<12x64xf32, #tpu.memory_space<vmem>>, vector<2x64xf32>
    tpu.vector_store %arg29[%c10_152, %c0_153], %137 {strides = array<i32>} : memref<12x64xf32, #tpu.memory_space<vmem>>, vector<2x64xf32>,
    %c0_154 = arith.constant 0 : index
    %c0_155 = arith.constant 0 : index
    %141 = vector.load %arg29[%c0_154, %c0_155] : memref<12x64xf32, #tpu.memory_space<vmem>>, vector<8x64xf32>
    %c1_156 = arith.constant 1 : index
    %c0_157 = arith.constant 0 : index
    %142 = vector.load %arg29[%c1_156, %c0_157] : memref<12x64xf32, #tpu.memory_space<vmem>>, vector<8x64xf32>
    %c2_158 = arith.constant 2 : index
    %c0_159 = arith.constant 0 : index
    %143 = vector.load %arg29[%c2_158, %c0_159] : memref<12x64xf32, #tpu.memory_space<vmem>>, vector<8x64xf32>
    %c3_160 = arith.constant 3 : index
    %c0_161 = arith.constant 0 : index
    %144 = vector.load %arg29[%c3_160, %c0_161] : memref<12x64xf32, #tpu.memory_space<vmem>>, vector<8x64xf32>
    %c4_162 = arith.constant 4 : index
    %c0_163 = arith.constant 0 : index
    %145 = vector.load %arg29[%c4_162, %c0_163] : memref<12x64xf32, #tpu.memory_space<vmem>>, vector<8x64xf32>
    %146 = tpu.concatenate %141, %142, %143, %144, %145 in 1 : vector<8x64xf32>, vector<8x64xf32>, vector<8x64xf32>, vector<8x64xf32>, vector<8x64xf32> -> vector<8x320xf32>
    %147 = arith.truncf %146 : vector<8x320xf32> to vector<8x320xbf16>
    %c0_164 = arith.constant 0 : index
    %c0_165 = arith.constant 0 : index
    %148 = vector.load %arg16[%c0_164, %c0_165] : memref<320x32xbf16, #tpu.memory_space<vmem>>, vector<320x32xbf16>
    %cst_166 = arith.constant dense<0.000000e+00> : vector<8x32xf32>
    %149 = tpu.matmul %147, %148, %cst_166 {dimension_numbers = #tpu.dot_dimension_numbers<[1], [0], [0], [1], [0, 0, 1, 1], [], []>} : vector<8x320xbf16>, vector<320x32xbf16>, vector<8x32xf32> -> vector<8x32xf32>
    %c0_167 = arith.constant 0 : index
    %c0_168 = arith.constant 0 : index
    %150 = vector.load %arg17[%c0_167, %c0_168] : memref<1x32xf32, #tpu.memory_space<vmem>>, vector<1x32xf32>
    %151 = vector.broadcast %150 : vector<1x32xf32> to vector<8x32xf32>
    %152 = arith.addf %149, %151 : vector<8x32xf32>
    %cst_169 = arith.constant 0.000000e+00 : f32
    %153 = vector.broadcast %cst_169 : f32 to vector<8x32xf32>
    %154 = arith.cmpf oge, %152, %153 : vector<8x32xf32>
    %cst_170 = arith.constant 2.000000e-01 : f32
    %155 = vector.broadcast %cst_170 : f32 to vector<8x32xf32>
    %156 = arith.mulf %155, %152 : vector<8x32xf32>
    %157 = arith.select %154, %152, %156 : vector<8x32xi1>, vector<8x32xf32>
    %c0_171 = arith.constant 0 : index
    %c0_172 = arith.constant 0 : index
    %158 = vector.load %arg18[%c0_171, %c0_172] : memref<16x8xbf16, #tpu.memory_space<vmem>>, vector<16x8xbf16>
    %159 = arith.truncf %157 : vector<8x32xf32> to vector<8x32xbf16>
    %cst_173 = arith.constant dense<0.000000e+00> : vector<16x32xf32>
    %160 = tpu.matmul %158, %159, %cst_173 {dimension_numbers = #tpu.dot_dimension_numbers<[1], [0], [0], [1], [0, 0, 1, 1], [], []>} : vector<16x8xbf16>, vector<8x32xbf16>, vector<16x32xf32> -> vector<16x32xf32>
    %cst_174 = arith.constant 0.000000e+00 : f32
    %161 = vector.broadcast %cst_174 : f32 to vector<2x32xf32>
    %c0_175 = arith.constant 0 : index
    %c0_176 = arith.constant 0 : index
    %162 = vector.load %arg30[%c0_175, %c0_176] : memref<20x32xf32, #tpu.memory_space<vmem>>, vector<2x32xf32>
    tpu.vector_store %arg30[%c0_175, %c0_176], %161 {strides = array<i32>} : memref<20x32xf32, #tpu.memory_space<vmem>>, vector<2x32xf32>,
    %c2_177 = arith.constant 2 : index
    %c0_178 = arith.constant 0 : index
    %163 = vector.load %arg30[%c2_177, %c0_178] : memref<20x32xf32, #tpu.memory_space<vmem>>, vector<16x32xf32>
    tpu.vector_store %arg30[%c2_177, %c0_178], %160 {strides = array<i32>} : memref<20x32xf32, #tpu.memory_space<vmem>>, vector<16x32xf32>,
    %c18_179 = arith.constant 18 : index
    %c0_180 = arith.constant 0 : index
    %164 = vector.load %arg30[%c18_179, %c0_180] : memref<20x32xf32, #tpu.memory_space<vmem>>, vector<2x32xf32>
    tpu.vector_store %arg30[%c18_179, %c0_180], %161 {strides = array<i32>} : memref<20x32xf32, #tpu.memory_space<vmem>>, vector<2x32xf32>,
    %c0_181 = arith.constant 0 : index
    %c0_182 = arith.constant 0 : index
    %165 = vector.load %arg30[%c0_181, %c0_182] : memref<20x32xf32, #tpu.memory_space<vmem>>, vector<16x32xf32>
    %c1_183 = arith.constant 1 : index
    %c0_184 = arith.constant 0 : index
    %166 = vector.load %arg30[%c1_183, %c0_184] : memref<20x32xf32, #tpu.memory_space<vmem>>, vector<16x32xf32>
    %c2_185 = arith.constant 2 : index
    %c0_186 = arith.constant 0 : index
    %167 = vector.load %arg30[%c2_185, %c0_186] : memref<20x32xf32, #tpu.memory_space<vmem>>, vector<16x32xf32>
    %c3_187 = arith.constant 3 : index
    %c0_188 = arith.constant 0 : index
    %168 = vector.load %arg30[%c3_187, %c0_188] : memref<20x32xf32, #tpu.memory_space<vmem>>, vector<16x32xf32>
    %c4_189 = arith.constant 4 : index
    %c0_190 = arith.constant 0 : index
    %169 = vector.load %arg30[%c4_189, %c0_190] : memref<20x32xf32, #tpu.memory_space<vmem>>, vector<16x32xf32>
    %170 = tpu.concatenate %165, %166, %167, %168, %169 in 1 : vector<16x32xf32>, vector<16x32xf32>, vector<16x32xf32>, vector<16x32xf32>, vector<16x32xf32> -> vector<16x160xf32>
    %171 = arith.truncf %170 : vector<16x160xf32> to vector<16x160xbf16>
    %c0_191 = arith.constant 0 : index
    %c0_192 = arith.constant 0 : index
    %172 = vector.load %arg19[%c0_191, %c0_192] : memref<160x8xbf16, #tpu.memory_space<vmem>>, vector<160x8xbf16>
    %cst_193 = arith.constant dense<0.000000e+00> : vector<16x8xf32>
    %173 = tpu.matmul %171, %172, %cst_193 {dimension_numbers = #tpu.dot_dimension_numbers<[1], [0], [0], [1], [0, 0, 1, 1], [], []>} : vector<16x160xbf16>, vector<160x8xbf16>, vector<16x8xf32> -> vector<16x8xf32>
    %c0_194 = arith.constant 0 : index
    %c0_195 = arith.constant 0 : index
    %174 = vector.load %arg20[%c0_194, %c0_195] : memref<1x8xf32, #tpu.memory_space<vmem>>, vector<1x8xf32>
    %175 = vector.broadcast %174 : vector<1x8xf32> to vector<16x8xf32>
    %176 = arith.addf %173, %175 : vector<16x8xf32>
    %c0_196 = arith.constant 0 : index
    %c0_197 = arith.constant 0 : index
    %c0_198 = arith.constant 0 : index
    %177 = vector.load %arg21[%c0_196, %c0_197, %c0_198] : memref<1x16x8xf32, #tpu.memory_space<vmem>>, vector<1x16x8xf32>
    %178 = vector.shape_cast %177 : vector<1x16x8xf32> to vector<16x8xf32>
    %179 = vector.shape_cast %176 : vector<16x8xf32> to vector<1x16x8xf32>
    tpu.vector_store %arg21[%c0_196, %c0_197, %c0_198], %179 {strides = array<i32>} : memref<1x16x8xf32, #tpu.memory_space<vmem>>, vector<1x16x8xf32>,
    return
  }
  func.func @transform_0(%arg0: i32) -> (i32, i32, i32) {
    %c0_i32 = arith.constant 0 : i32
    %c0_i32_0 = arith.constant 0 : i32
    %c0_i32_1 = arith.constant 0 : i32
    return %arg0, %c0_i32, %c0_i32_0 : i32, i32, i32
  }
  func.func @transform_1(%arg0: i32) -> (i32, i32) {
    %c0_i32 = arith.constant 0 : i32
    %c0_i32_0 = arith.constant 0 : i32
    %c0_i32_1 = arith.constant 0 : i32
    return %c0_i32, %c0_i32_0 : i32, i32
  }
  func.func @transform_2(%arg0: i32) -> (i32, i32) {
    %c0_i32 = arith.constant 0 : i32
    %c0_i32_0 = arith.constant 0 : i32
    %c0_i32_1 = arith.constant 0 : i32
    return %c0_i32, %c0_i32_0 : i32, i32
  }
  func.func @transform_3(%arg0: i32) -> (i32, i32) {
    %c0_i32 = arith.constant 0 : i32
    %c0_i32_0 = arith.constant 0 : i32
    %c0_i32_1 = arith.constant 0 : i32
    return %c0_i32, %c0_i32_0 : i32, i32
  }
  func.func @transform_4(%arg0: i32) -> (i32, i32) {
    %c0_i32 = arith.constant 0 : i32
    %c0_i32_0 = arith.constant 0 : i32
    %c0_i32_1 = arith.constant 0 : i32
    return %c0_i32, %c0_i32_0 : i32, i32
  }
  func.func @transform_5(%arg0: i32) -> (i32, i32) {
    %c0_i32 = arith.constant 0 : i32
    %c0_i32_0 = arith.constant 0 : i32
    %c0_i32_1 = arith.constant 0 : i32
    return %c0_i32, %c0_i32_0 : i32, i32
  }
  func.func @transform_6(%arg0: i32) -> (i32, i32) {
    %c0_i32 = arith.constant 0 : i32
    %c0_i32_0 = arith.constant 0 : i32
    %c0_i32_1 = arith.constant 0 : i32
    return %c0_i32, %c0_i32_0 : i32, i32
  }
  func.func @transform_7(%arg0: i32) -> (i32, i32) {
    %c0_i32 = arith.constant 0 : i32
    %c0_i32_0 = arith.constant 0 : i32
    %c0_i32_1 = arith.constant 0 : i32
    return %c0_i32, %c0_i32_0 : i32, i32
  }
  func.func @transform_8(%arg0: i32) -> (i32, i32) {
    %c0_i32 = arith.constant 0 : i32
    %c0_i32_0 = arith.constant 0 : i32
    %c0_i32_1 = arith.constant 0 : i32
    return %c0_i32, %c0_i32_0 : i32, i32
  }
  func.func @transform_9(%arg0: i32) -> (i32, i32) {
    %c0_i32 = arith.constant 0 : i32
    %c0_i32_0 = arith.constant 0 : i32
    %c0_i32_1 = arith.constant 0 : i32
    return %c0_i32, %c0_i32_0 : i32, i32
  }
  func.func @transform_10(%arg0: i32) -> (i32, i32) {
    %c0_i32 = arith.constant 0 : i32
    %c0_i32_0 = arith.constant 0 : i32
    %c0_i32_1 = arith.constant 0 : i32
    return %c0_i32, %c0_i32_0 : i32, i32
  }
  func.func @transform_11(%arg0: i32) -> (i32, i32) {
    %c0_i32 = arith.constant 0 : i32
    %c0_i32_0 = arith.constant 0 : i32
    %c0_i32_1 = arith.constant 0 : i32
    return %c0_i32, %c0_i32_0 : i32, i32
  }
  func.func @transform_12(%arg0: i32) -> (i32, i32) {
    %c0_i32 = arith.constant 0 : i32
    %c0_i32_0 = arith.constant 0 : i32
    %c0_i32_1 = arith.constant 0 : i32
    return %c0_i32, %c0_i32_0 : i32, i32
  }
  func.func @transform_13(%arg0: i32) -> (i32, i32) {
    %c0_i32 = arith.constant 0 : i32
    %c0_i32_0 = arith.constant 0 : i32
    %c0_i32_1 = arith.constant 0 : i32
    return %c0_i32, %c0_i32_0 : i32, i32
  }
  func.func @transform_14(%arg0: i32) -> (i32, i32) {
    %c0_i32 = arith.constant 0 : i32
    %c0_i32_0 = arith.constant 0 : i32
    %c0_i32_1 = arith.constant 0 : i32
    return %c0_i32, %c0_i32_0 : i32, i32
  }
  func.func @transform_15(%arg0: i32) -> (i32, i32) {
    %c0_i32 = arith.constant 0 : i32
    %c0_i32_0 = arith.constant 0 : i32
    %c0_i32_1 = arith.constant 0 : i32
    return %c0_i32, %c0_i32_0 : i32, i32
  }
  func.func @transform_16(%arg0: i32) -> (i32, i32) {
    %c0_i32 = arith.constant 0 : i32
    %c0_i32_0 = arith.constant 0 : i32
    %c0_i32_1 = arith.constant 0 : i32
    return %c0_i32, %c0_i32_0 : i32, i32
  }
  func.func @transform_17(%arg0: i32) -> (i32, i32) {
    %c0_i32 = arith.constant 0 : i32
    %c0_i32_0 = arith.constant 0 : i32
    %c0_i32_1 = arith.constant 0 : i32
    return %c0_i32, %c0_i32_0 : i32, i32
  }
  func.func @transform_18(%arg0: i32) -> (i32, i32) {
    %c0_i32 = arith.constant 0 : i32
    %c0_i32_0 = arith.constant 0 : i32
    %c0_i32_1 = arith.constant 0 : i32
    return %c0_i32, %c0_i32_0 : i32, i32
  }
  func.func @transform_19(%arg0: i32) -> (i32, i32) {
    %c0_i32 = arith.constant 0 : i32
    %c0_i32_0 = arith.constant 0 : i32
    %c0_i32_1 = arith.constant 0 : i32
    return %c0_i32, %c0_i32_0 : i32, i32
  }
  func.func @transform_20(%arg0: i32) -> (i32, i32, i32) {
    %c0_i32 = arith.constant 0 : i32
    %c0_i32_0 = arith.constant 0 : i32
    %c0_i32_1 = arith.constant 0 : i32
    return %arg0, %c0_i32, %c0_i32_0 : i32, i32, i32
  }
  func.func @transform_21(%arg0: i32) -> (i32, i32, i32) {
    %c0_i32 = arith.constant 0 : i32
    %c0_i32_0 = arith.constant 0 : i32
    %c0_i32_1 = arith.constant 0 : i32
    return %arg0, %c0_i32, %c0_i32_0 : i32, i32, i32
  }
}

</mosaic_0001>

<bundles_post_ra>
// kernel: forward.1
= control target key start
LH: loop header
LB: loop body
LE: loop exit
PB: predicated region body
PF: predicated region fallthrough
CT: control target
= control target key end

     0   :  { %s5859_s0 = inlined_call_operand.vmem [shape: f32[2,16,8], index: 0, kind: input, shape index: {}]   ;;  %s5860_s1 = inlined_call_operand.vmem [shape: bf16[40,32], index: 1, kind: input, shape index: {}]   ;;  %s5861_s2 = inlined_call_operand.vmem [shape: f32[1,32], index: 2, kind: input, shape index: {}]   ;;  %s5862_s3 = inlined_call_operand.hbm [shape: bf16[160,64], index: 3, kind: input, shape index: {}]   ;;  %s5863_s4 = inlined_call_operand.vmem [shape: f32[1,64], index: 4, kind: input, shape index: {}]   ;;  %s5864_s5 = inlined_call_operand.hbm [shape: bf16[320,128], index: 5, kind: input, shape index: {}]   ;;  %s5865_s6 = inlined_call_operand.vmem [shape: f32[1,128], index: 6, kind: input, shape index: {}]   ;;  %s5866_s7 = inlined_call_operand.hbm [shape: bf16[640,256], index: 7, kind: input, shape index: {}]   ;;  %s5867_s8 = inlined_call_operand.vmem [shape: f32[1,256], index: 8, kind: input, shape index: {}]   ;;  %s5868_s9 = inlined_call_operand.hbm [shape: bf16[1280,128], index: 9, kind: input, shape index: {}]   ;;  %s5869_s10 = inlined_call_operand.vmem [shape: f32[1,128], index: 10, kind: input, shape index: {}]   ;;  %s5870_s11 = inlined_call_operand.vmem [shape: bf16[4,2], index: 11, kind: input, shape index: {}]   ;;  %s5871_s12 = inlined_call_operand.hbm [shape: bf16[640,64], index: 12, kind: input, shape index: {}]   ;;  %s5872_s13 = inlined_call_operand.vmem [shape: f32[1,64], index: 13, kind: input, shape index: {}]   ;;  %s5873_s14 = inlined_call_operand.vmem [shape: bf16[8,4], index: 14, kind: input, shape index: {}]   ;;  %s5874_s15 = inlined_call_operand.hbm [shape: bf16[320,32], index: 15, kind: input, shape index: {}]   ;;  %s5875_s16 = inlined_call_operand.vmem [shape: f32[1,32], index: 16, kind: input, shape index: {}]   ;;  %s5876_s17 = inlined_call_operand.vmem [shape: bf16[16,8], index: 17, kind: input, shape index: {}]   ;;  %s5877_s18 = inlined_call_operand.hbm [shape: bf16[160,8], index: 18, kind: input, shape index: {}]   ;;  %s5878_s19 = inlined_call_operand.vmem [shape: f32[1,8], index: 19, kind: input, shape index: {}]   ;;  %s5879_s20 = inlined_call_operand.vmem [shape: f32[2,16,8], index: 20, kind: output, shape index: {0}]   ;;  %s5880_s21 = inlined_call_operand.vmem [shape: f32[2,1,256], index: 21, kind: output, shape index: {1}]  }
   0x1   :  { %5883 = sst [smem:[#allocation26_spill]] %s5859_s0 }
   0x2   :  { %5884 = sst [smem:[#allocation27_spill]] %s5860_s1 }
   0x3   :  { %5885 = sst [smem:[#allocation28_spill]] %s5861_s2 }
   0x4   :  { %5886 = sst [smem:[#allocation29_spill]] %s5862_s3 }
   0x5   :  { %5887 = sst [smem:[#allocation30_spill]] %s5863_s4 }
   0x6   :  { %5888 = sst [smem:[#allocation31_spill]] %s5864_s5 }
   0x7   :  { %5889 = sst [smem:[#allocation32_spill]] %s5866_s7 }
   0x8   :  { %5890 = sst [smem:[#allocation33_spill]] %s5868_s9 }
   0x9   :  { %5891 = sst [smem:[#allocation34_spill]] %s5874_s15 }
   0xa   :  { %5892 = sst [smem:[#allocation35_spill]] %s5879_s20 }
   0xb   :  { %27 = vsyncpa [#allocation11], 0 }
   0xc   :  { %28 = vsyncpa [#allocation13], 0 }
   0xd   :  { %29 = vsyncpa [#allocation16], 0 }
   0xe   :  { %30 = vsyncpa [#allocation19], 0  ;;  %s5602_s2 = smov 0  }
   0xf LB: > { %5893 = sst [smem:[#allocation25_spill]] %s5472_s2  ;;  %s5608_s25 = sadd.s32 4294967295, %s5472_s2   ;;  %s5472_s2 = sphi %s5602_s2, %s36_s2  }
  0x10   : > { %p3774_p0 = scmp.ge.s32.totalorder %s5472_s2, 1  ;;  %p518_p1 = scmp.lt.s32.totalorder %s5472_s2, 3 }
  0x11   : > { %p5173_p2 = scmp.eq.s32.totalorder %s5608_s25, 0  ;;  %s5894_s3 = sld [smem:[#allocation31_spill]] }
  0x12   : > { %p5616_p3 = pnand %p3774_p0, %p518_p1  ;;  %s5896_s9 = sld [smem:[#allocation33_spill]] }
  0x13   : > { %s5474_s5 = smov [#allocation12]   ;;  %s5475_s1 = smov [#allocation15]  }
  0x14   : > { %p5151_p4 = pneg %p5616_p3  ;;  %s554_s22 = sshll.u32 %s5474_s5, 4  ;;  %s555_s22 = int_to_ptr.vmem [resolvable:$true] %s554_s22 }
  0x15   : > { %s588_s24 = sshll.u32 %s5475_s1, 4  ;;  %s5898_s15 = sld [smem:[#allocation34_spill]]  ;;  %s589_s24 = int_to_ptr.vmem [resolvable:$true] %s588_s24 }
  0x16   : > { %p5627_p5 = pnand %p5173_p2, %p5151_p4  ;;  %s5476_s0 = smov 64  }
  0x17   : > { %s552_s28 = sshll.u32 %s5894_s3, 4  ;;  %s5477_s4 = smov 4   ;;  %s553_s28 = int_to_ptr.hbm [resolvable:$true] %s552_s28 }
  0x18   : > { %s586_s30 = sshll.u32 %s5896_s9, 4  ;;  %s5478_s5 = smov [#allocation18]   ;;  %s587_s30 = int_to_ptr.hbm [resolvable:$true] %s586_s30 }
  0x19   : > { %5157 = dma.hbm_to_vmem [thread:$0]  (!%p5627_p5), %s553_s28, 2560, %s555_s22, [#allocation13], %s5476_s0, %s5476_s0, %s5477_s4  }
  0x1a   : > { %5163 = dma.hbm_to_vmem [thread:$0]  (!%p5627_p5), %s587_s30, 10240, %s589_s24, [#allocation16], %s5476_s0, %s5476_s0, %s5477_s4  }
  0x1b   : > { %s626_s3 = sshll.u32 %s5898_s15, 4  ;;  %s628_s1 = sshll.u32 %s5478_s5, 4  ;;  %s627_s3 = int_to_ptr.hbm [resolvable:$true] %s626_s3  ;;  %s629_s1 = int_to_ptr.vmem [resolvable:$true] %s628_s1 }
  0x1c   : > { %s5899_s27 = sld [smem:[#allocation29_spill]]  ;;  %s5479_s30 = smov [#allocation10]  }
  0x1d   : > { %5169 = dma.hbm_to_vmem [thread:$0]  (!%p5627_p5), %s627_s3, 2560, %s629_s1, [#allocation19], %s5476_s0, %s5476_s0, %s5477_s4  }
  0x1e   : > { %s5900_s7 = sld [smem:[#allocation32_spill]]  ;;  %s537_s24 = sshll.u32 %s5479_s30, 4  ;;  %s538_s24 = int_to_ptr.vmem [resolvable:$true] %s537_s24 }
  0x1f   : > { %s5480_s9 = smov [#allocation14]   ;;  %s5481_s26 = smov 128  }
  0x20   : > { %s571_s5 = sshll.u32 %s5480_s9, 4  ;;  %s5482_s3 = smov 8   ;;  %s572_s5 = int_to_ptr.vmem [resolvable:$true] %s571_s5 }
  0x21   : > { %s606_s28 = sshll.u32 %s5871_s12, 4  ;;  %s5483_s22 = smov [#allocation17]   ;;  %s607_s28 = int_to_ptr.hbm [resolvable:$true] %s606_s28 }
  0x22   : > { %s535_s15 = sshll.u32 %s5899_s27, 4  ;;  %s608_s30 = sshll.u32 %s5483_s22, 4  ;;  %s536_s15 = int_to_ptr.hbm [resolvable:$true] %s535_s15  ;;  %s609_s30 = int_to_ptr.vmem [resolvable:$true] %s608_s30 }
  0x23   : > { %5154 = dma.hbm_to_vmem [thread:$0]  (!%p5627_p5), %s536_s15, 1280, %s538_s24, [#allocation11], %s5476_s0, %s5476_s0, %s5477_s4  }
  0x24   : > { %s569_s2 = sshll.u32 %s5900_s7, 4  ;;  %s646_s15 = sshll.u32 %s5877_s18, 4  ;;  %s570_s2 = int_to_ptr.hbm [resolvable:$true] %s569_s2  ;;  %s647_s15 = int_to_ptr.hbm [resolvable:$true] %s646_s15 }
  0x25   : > { %5160 = dma.hbm_to_vmem [thread:$0]  (!%p5627_p5), %s570_s2, 10240, %s572_s5, [#allocation13], %s5481_s26, %s5481_s26, %s5482_s3  }
  0x26   : > { %5166 = dma.hbm_to_vmem [thread:$0]  (!%p5627_p5), %s607_s28, 5120, %s609_s30, [#allocation16], %s5476_s0, %s5476_s0, %s5477_s4  }
  0x27   : > { %s5484_s24 = smov [#allocation20]   ;;  %675 = sbr.rel (%p5616_p3) target bundleno = 2296 (0x8f8), region = 100 }
  0x28   : > { %s648_s2 = sshll.u32 %s5484_s24, 4  ;;  %s649_s2 = int_to_ptr.vmem [resolvable:$true] %s648_s2 }
  0x29   : > { %5172 = dma.hbm_to_vmem [thread:$0]  (!%p5627_p5), %s647_s15, 1280, %s649_s2, [#allocation19], %s5476_s0, %s5476_s0, %s5477_s4  }
  0x2c   : > { %5455 = dma.done.wait (%p5173_p2), [#allocation11], 1280  }
  0x2d   : > { %5457 = vsyncadd (%p5173_p2), [#allocation11], 4294966016 }
  0x2e   : > { %5459 = dma.done.wait (%p5173_p2), [#allocation13], 12800  }
  0x2f   : > { %5461 = vsyncadd (%p5173_p2), [#allocation13], 4294954496 }
  0x30   : > { %5463 = dma.done.wait (%p5173_p2), [#allocation16], 15360  }
  0x31   : > { %5465 = vsyncadd (%p5173_p2), [#allocation16], 4294951936 }
  0x32   : > { %5467 = dma.done.wait (%p5173_p2), [#allocation19], 3840  }
  0x33   : > { %5469 = vsyncadd (%p5173_p2), [#allocation19], 4294963456  ;;  %p770_p6 = scmp.lt.s32.totalorder %s5608_s25, 1  ;;  %vm787_vm0 = vcmask 58368   ;;  %v5485_v0 = vmov 0.0   ;;  %s5901_s23 = sld [smem:[#allocation26_spill]] }
  0x34   : > { %788 = vst.msk [vmem:[#allocation2] sm:$0x3] %vm787_vm0, %v5485_v0  ;;  %vm789_vm1 = vcmask 64512   ;;  %s5486_s4 = smov 8   ;;  %s5487_s9 = smov 24   ;;  %vm854_vm2 = vcmask 1043456  }
  0x35   : > { %s5908_s25 = smov (!%p770_p6, %s5608_s25), 1  ;;  %792 = vst.msk [vmem:[#allocation2 + $0x12] sm:$0x3] %vm787_vm0, %v5485_v0  ;;  %s5488_s5 = smov 16   ;;  %vm819_vm3 = vcmask 130048   ;;  %vm821_vm4 = vcmask 195584  }
  0x36   : > { %1258 = vst [vmem:[#allocation5] sm:$0x3] %v5485_v0  ;;  %s4858_s7 = sshll.u32 %s5908_s25, 4  ;;  %s5489_s26 = smov 32   ;;  %vm823_vm5 = vcmask 261120   ;;  %vm850_vm6 = vcmask 326656  }
  0x37   : > { %1260 = vst [vmem:[#allocation5 + $0x4] sm:$0x3] %v5485_v0  ;;  %s5902_s27 = sld [smem:[#allocation27_spill]]  ;;  %vm874_vm7 = vcmask 254976   ;;  %v4871_v23 = vld [vmem:[#allocation10 + $0x48] sm:$0xff]  ;;  %v4870_v24 = vld [vmem:[#allocation10 + $0x40] sm:$0xff] }
  0x38   : > { %1913 = vst [vmem:[#allocation6] sm:$0x3] %v5485_v0  ;;  %1012 = vmatpush.bf16.msra.mxu2 %v4871_v23  ;;  %v4869_v25 = vld [vmem:[#allocation10 + $0x38] sm:$0xff]  ;;  %s5903_s20 = sld [smem:[#allocation28_spill]]  ;;  %s5490_s29 = smov 96   ;;  %v4868_v37 = vld [vmem:[#allocation10 + $0x30] sm:$0xff] }
  0x39   : > { %s774_s0 = scalar_lea.vmem %s5901_s23, %s4858_s7  ;;  %1914 = vst [vmem:[#allocation6 + $0x8] sm:$0x3] %v5485_v0  ;;  %993 = vmatpush.bf16.msra.mxu1 %v4869_v25  ;;  %s5491_s23 = smov 64   ;;  %v4867_v38 = vld [vmem:[#allocation10 + $0x28] sm:$0xff]  ;;  %v4866_v39 = vld [vmem:[#allocation10 + $0x20] sm:$0xff]  ;;  %v4865_v40 = vld [vmem:[#allocation10 + $0x18] sm:$0xff] }
  0x3a   : > { %v785_v1 = vld [vmem:[%s774_s0] sm:$0xff]  ;;  %v786_v2 = vld [vmem:[%s774_s0 + $0x8] sm:$0xff]  ;;  %1923 = vst [vmem:[#allocation6] sm:$0x30] %v5485_v0  ;;  %v4862_v43 = vld [vmem:[#allocation10] sm:$0xff]  ;;  %vm900_vm9 = vcmask 523264  }
  0x3b   : > { %790 = vst.msk [vmem:[#allocation2 + $0x2] sm:$0xff] %vm789_vm1, %v785_v1  ;;  %v4864_v41 = vld [vmem:[#allocation10 + $0x10] sm:$0xff]  ;;  %v4863_v42 = vld [vmem:[#allocation10 + $0x8] sm:$0xff]  ;;  %vm902_vm10 = vcmask 785408   ;;  %v4890_v55 = vld [vmem:[#allocation12 + $0x90] sm:$0xff]  ;;  %vm1022_vm11 = vcmask 517120  }
  0x3c   : > { %791 = vst.msk [vmem:[#allocation2 + $0xa] sm:$0xff] %vm789_vm1, %v786_v2  ;;  %1013 = vmatpush.bf16.msra.mxu2 %v4870_v24  ;;  %v4891_v54 = vld [vmem:[#allocation12 + $0x98] sm:$0xff]  ;;  %v4889_v56 = vld [vmem:[#allocation12 + $0x88] sm:$0xff]  ;;  %v4888_v57 = vld [vmem:[#allocation12 + $0x80] sm:$0xff]  ;;  %vm1024_vm13 = vcmask 519168   ;;  %vm1900_vm0 = vcmask 1040384  }
  0x3d   : > { %1924 = vst [vmem:[#allocation6 + $0x8] sm:$0x30] %v5485_v0  ;;  %v830_v7 = vld [vmem:[%s5902_s27 + $0x10] sm:$0xf]  ;;  %v4861_v11 = vld [vmem:[%s5902_s27 + $0x8] sm:$0xff]  ;;  %v4860_v12 = vld [vmem:[%s5902_s27] sm:$0xff]  ;;  %994 = vmatpush.bf16.msra.mxu1 %v4868_v37 }
  0x3e   : > { %2768 = vst [vmem:[#allocation7] sm:$0x3] %v5485_v0  ;;  %v844_v8 = vunpack.c.l.b16 %v830_v7  ;;  %v5233_v26 = vld [vmem:[%s5903_s20] ss:$0 sm:$0xff]  ;;  %v4878_v60 = vld [vmem:[#allocation12 + $0x30] sm:$0xff]  ;;  %v4877_v62 = vld [vmem:[#allocation12 + $0x28] sm:$0xff] }
  0x3f   : > { %2770 = vst [vmem:[#allocation7 + $0x6] sm:$0x3] %v5485_v0  ;;  %v4879_v58 = vld [vmem:[#allocation12 + $0x38] sm:$0xff]  ;;  %v4886_v61 = vld [vmem:[#allocation12 + $0x70] sm:$0xff]  ;;  %v4885_v63 = vld [vmem:[#allocation12 + $0x68] sm:$0xff]  ;;  %s3795_s22 = sshll.u32 %s5908_s25, 1 }
  0x40   : > { %v847_v9 = vpack.c.b16 %v844_v8, %v844_v8  ;;  %875 = vst.msk [vmem:[#allocation3] sm:$0x3] %vm874_vm7, %v5485_v0  ;;  %v4887_v59 = vld [vmem:[#allocation12 + $0x78] sm:$0xff]  ;;  %1216 = vmatpush.bf16.msra.mxu3 %v4879_v58  ;;  %v4884_v2 = vld [vmem:[#allocation12 + $0x60] sm:$0xff]  ;;  %s783_s24 = scalar_lea.vmem %s5880_s21, %s3795_s22  ;;  %s5905_s2 = sld [smem:[#allocation35_spill]] }
  0x41   : > { %3457 = vst.msk [vmem:[#allocation9 + $0x12] sm:$0x3] %vm874_vm7, %v5485_v0  ;;  %995 = vmatpush.bf16.msra.mxu1 %v4867_v38  ;;  %1229 = vmatpush.bf16.msrb.mxu2 %v4887_v59  ;;  %v4907_v23 = vld [vmem:[#allocation14 + $0x74] sm:$0xf0]  ;;  %v3977_v24 = vld [vmem:[#allocation14 + $0x60] sm:$0xf] }
  0x42   : > { %v856_v10 = vsel %vm854_vm2, %v847_v9, 0  ;;  %877 = vst.msk [vmem:[#allocation3 + $0xa] sm:$0x3] %vm874_vm7, %v5485_v0  ;;  %v4874_v9 = vld [vmem:[#allocation12 + $0x10] sm:$0xff]  ;;  %v4901_v38 = vld [vmem:[#allocation14 + $0x44] sm:$0xf0] }
  0x43   : > { %v795_v3 = vld [vmem:[#allocation2 + $0x1] ss:$2 sm:$0xff]  ;;  %v797_v5 = vld [vmem:[#allocation2 + $0x2] ss:$2 sm:$0xff]  ;;  %863 = vmatpush.bf16.msra.mxu0 %v856_v10  ;;  %3454 = vst.msk [vmem:[#allocation9] sm:$0x3] %vm874_vm7, %v5485_v0 }
  0x44   : > { %v799_v4 = vld [vmem:[#allocation2 + $0x3] ss:$2 sm:$0xff]  ;;  %803 = vrot.lane.b32.xlu0 %v795_v3, %s5486_s4  ;;  %v801_v6 = vld [vmem:[#allocation2 + $0x4] ss:$2 sm:$0xff]  ;;  %1026 = vst.msk [vmem:[#allocation4 + $0x6] sm:$0x3] %vm1022_vm11, %v5485_v0  ;;  %1217 = vmatpush.bf16.msra.mxu3 %v4878_v60 }
  0x45   : > { %811 = vrot.lane.b32.xlu1 %v799_v4, %s5487_s9  ;;  %v793_v15 = vld [vmem:[#allocation2] ss:$2 sm:$0xff]  ;;  %996 = vmatpush.bf16.msra.mxu1 %v4866_v39  ;;  %1023 = vst.msk [vmem:[#allocation4] sm:$0x3] %vm1022_vm11, %v5485_v0  ;;  %s5904_s9 = sld [smem:[#allocation30_spill]]  ;;  %v4882_v10 = vld [vmem:[#allocation12 + $0x50] sm:$0xff] }
  0x46   : > { %3196 = vst.msk [vmem:[#allocation8] sm:$0x3] %vm1022_vm11, %v5485_v0  ;;  %1230 = vmatpush.bf16.msrb.mxu2 %v4886_v61  ;;  %v4033_v39 = vld [vmem:[#allocation14 + $0xd0] sm:$0xf]  ;;  %v3945_v59 = vld [vmem:[#allocation14 + $0x20] sm:$0xf]  ;;  %s779_s20 = scalar_lea.vmem %s5905_s2, %s4858_s7 }
  0x47   : > { %864 = vmatpush.bf16.msra.mxu0 %v4861_v11  ;;  %3198 = vst.msk [vmem:[#allocation8 + $0xa] sm:$0x3] %vm1022_vm11, %v5485_v0  ;;  %v4876_v0 = vld [vmem:[#allocation12 + $0x20] sm:$0xff]  ;;  %v4897_v60 = vld [vmem:[#allocation14 + $0x24] sm:$0xf0]  ;;  %vm2748_vm7 = vcmask 15360  }
  0x48   : > { %1218 = vmatpush.bf16.msra.mxu3 %v4877_v62  ;;  %v4017_v62 = vld [vmem:[#allocation14 + $0xb0] sm:$0xf]  ;;  %vm3179_vm11 = vcmask 1041408  }
  0x49   : > { %997 = vmatpush.bf16.msra.mxu1 %v4865_v40  ;;  %v4919_v40 = vld [vmem:[#allocation14 + $0xd4] sm:$0xf0] }
  0x4a   : > { %1231 = vmatpush.bf16.msrb.mxu2 %v4885_v63  ;;  %v4915_v63 = vld [vmem:[#allocation14 + $0xb4] sm:$0xf0] }
  0x4b   : > { %865 = vmatpush.bf16.msra.mxu0 %v4860_v12  ;;  %v5234_v1 = vld [vmem:[%s5904_s9] ss:$0 sm:$0xff] }
  0x4c   : > { %807 = vrot.lane.b32.xlu0 %v797_v5, %s5488_s5  ;;  %1219 = vmatpush.bf16.msra.mxu3 %v4876_v0  ;;  %v4875_v5 = vld [vmem:[#allocation12 + $0x18] sm:$0xff] }
  0x4d   : > { %815 = vrot.lane.b32.xlu1 %v801_v6, %s5489_s26  ;;  %998 = vmatpush.bf16.msra.mxu1 %v4864_v41  ;;  %v4883_v6 = vld [vmem:[#allocation12 + $0x58] sm:$0xff] }
  0x4e   : > { %1232 = vmatpush.bf16.msrb.mxu2 %v4884_v2 }
  0x4f   : > { %1246 = vmatpush.bf16.msrb.mxu0 %v4891_v54 }
  0x50   : > { %1220 = vmatpush.bf16.msra.mxu3 %v4875_v5  ;;  %v4953_v5 = vld [vmem:[#allocation14 + $0x1e4] sm:$0xf0] }
  0x51   : > { %999 = vmatpush.bf16.msra.mxu1 %v4863_v42  ;;  %v3953_v42 = vld [vmem:[#allocation14 + $0x30] sm:$0xf] }
  0x52   : > { %1233 = vmatpush.bf16.msrb.mxu2 %v4883_v6 }
  0x53   : > { %1247 = vmatpush.bf16.msrb.mxu0 %v4890_v55 }
  0x54   : > { %1221 = vmatpush.bf16.msra.mxu3 %v4874_v9 }
  0x55   : > { %1000 = vmatpush.bf16.msra.mxu1 %v4862_v43  ;;  %v4899_v43 = vld [vmem:[#allocation14 + $0x34] sm:$0xf0] }
  0x56   : > { %1234 = vmatpush.bf16.msrb.mxu2 %v4882_v10  ;;  %v3954_v58 = vor.u32 %v4899_v43, %v3953_v42  ;;  %v3946_v10 = vor.u32 %v4897_v60, %v3945_v59  ;;  %v3993_v43 = vld [vmem:[#allocation14 + $0x80] sm:$0xf]  ;;  %v4904_v60 = vld [vmem:[#allocation14 + $0x64] sm:$0xf] }
  0x57   : > { %1248 = vmatpush.bf16.msrb.mxu0 %v4889_v56 }
  0x5b   : > { %1249 = vmatpush.bf16.msrb.mxu0 %v4888_v57 }
  0xb6   : > { %v804_v13 = vpop.permute.xlu0 %803 }
  0xb7   : > { %v812_v14 = vpop.permute.xlu1 %811  ;;  %v818_v16 = vsel %vm789_vm1, %v793_v15, %v804_v13  ;;  %v4873_v13 = vld [vmem:[#allocation12 + $0x8] sm:$0xff] }
  0xb8   : > { %1222 = vmatpush.bf16.msra.mxu3 %v4873_v13  ;;  %v4018_v13 = vor.u32 %v4915_v63, %v4017_v62  ;;  %v4073_v62 = vld [vmem:[#allocation14 + $0x120] sm:$0xf]  ;;  %v4929_v63 = vld [vmem:[#allocation14 + $0x124] sm:$0xf0] }
  0xbe   : > { %v808_v17 = vpop.permute.xlu0 %807 }
  0xbf   : > { %v816_v18 = vpop.permute.xlu1 %815  ;;  %v820_v19 = vsel %vm819_vm3, %v818_v16, %v808_v17 }
  0xc0   : > { %v822_v20 = vsel %vm821_vm4, %v820_v19, %v812_v14  ;;  %v4881_v14 = vld [vmem:[#allocation12 + $0x48] sm:$0xff] }
  0xc1   : > { %v824_v21 = vsel %vm823_vm5, %v822_v20, %v816_v18  ;;  %1235 = vmatpush.bf16.msrb.mxu2 %v4881_v14  ;;  %v4872_v20 = vld [vmem:[#allocation12] sm:$0xff] }
  0xc2   : > { %v825_v22 = vpack.c.bf16 %v824_v21, %v824_v21  ;;  %v4880_v21 = vld [vmem:[#allocation12 + $0x40] sm:$0xff]  ;;  %1223 = vmatpush.bf16.msra.mxu3 %v4872_v20 }
  0xc3   : > { %v4009_v14 = vld [vmem:[#allocation14 + $0xa0] sm:$0xf] }
  0xc4   : > { %3804 = vmatmul.msk.bf16.vlgmr.msra.gmra.mxu0 %vm850_vm6, %v825_v22  ;;  %v3985_v22 = vld [vmem:[#allocation14 + $0x70] sm:$0xf] }
  0xc5   : > { %1236 = vmatpush.bf16.msrb.mxu2 %v4880_v21  ;;  %v3986_v25 = vor.u32 %v4907_v23, %v3985_v22  ;;  %v3929_v23 = vld [vmem:[#allocation14] sm:$0xf] }
  0xc7   : > { %1761 = vmatpush.bf16.msra.mxu0 %v3986_v25 }
 0x141   : > { %v867_v27 = vpop.f32.mrf.mxu0 }
 0x142   : > { %v868_v28 = vadd.f32 %v5233_v26, %v867_v27  ;;  %v4905_v26 = vld [vmem:[#allocation14 + $0x64] sm:$0xf0] }
 0x143   : > { %v3978_v27 = vor.u32 %v4905_v26, %v3977_v24  ;;  %v4893_v24 = vld [vmem:[#allocation14 + $0x4] sm:$0xf0] }
 0x144   : > { %vm871_vm8 = vcmp.ge.f32.partialorder %v868_v28, 0.0  ;;  %v872_v29 = vmul.f32 0.2, %v868_v28 }
 0x145   : > { %1762 = vmatpush.bf16.msra.mxu0 %v3978_v27  ;;  %v4001_v27 = vld [vmem:[#allocation14 + $0x90] sm:$0xf] }
 0x146   : > { %v873_v30 = vsel %vm871_vm8, %v868_v28, %v872_v29  ;;  %v3969_v28 = vld [vmem:[#allocation14 + $0x50] sm:$0xf]  ;;  %v4903_v29 = vld [vmem:[#allocation14 + $0x54] sm:$0xf0] }
 0x147   : > { %876 = vst.msk [vmem:[#allocation3 + $0x2] sm:$0xff] %vm823_vm5, %v873_v30  ;;  %v4049_v30 = vld [vmem:[#allocation14 + $0xf0] sm:$0xf] }
 0x149   : > { %v869_v31 = vpop.f32.mrf.mxu0 }
 0x14a   : > { %v4923_v31 = vld [vmem:[#allocation14 + $0xf4] sm:$0xf0] }
 0x14e   : > { %v884_v32 = vld [vmem:[#allocation3 + $0x3] ss:$2 sm:$0xf]  ;;  %v886_v34 = vld [vmem:[#allocation3 + $0x4] ss:$2 sm:$0xf] }
 0x14f   : > { %v880_v33 = vld [vmem:[#allocation3 + $0x1] ss:$2 sm:$0xf]  ;;  %896 = vrot.lane.b32.xlu0 %v884_v32, %s5490_s29  ;;  %v905_v35 = vpack.c.bf16 %v886_v34, %v886_v34  ;;  %v882_v36 = vld [vmem:[#allocation3 + $0x2] ss:$2 sm:$0xf]  ;;  %v4050_v32 = vor.u32 %v4923_v31, %v4049_v30 }
 0x150   : > { %888 = vrot.lane.b32.xlu2 %v880_v33, %s5489_s26  ;;  %v878_v46 = vld [vmem:[#allocation3] ss:$2 sm:$0xf]  ;;  %v4041_v33 = vld [vmem:[#allocation14 + $0xe0] sm:$0xf] }
 0x151   : > { %3845 = vmatmul.msk.bf16.vlgmr.msra.gmra.mxu2 %vm823_vm5, %v905_v35  ;;  %v4921_v34 = vld [vmem:[#allocation14 + $0xe4] sm:$0xf0]  ;;  %v3970_v35 = vor.u32 %v4903_v29, %v3969_v28  ;;  %1774 = vmatpush.bf16.msrb.mxu1 %v4050_v32  ;;  %v4911_v28 = vld [vmem:[#allocation14 + $0x94] sm:$0xf0]  ;;  %v4089_v29 = vld [vmem:[#allocation14 + $0x140] sm:$0xf] }
 0x152   : > { %v4042_v37 = vor.u32 %v4921_v34, %v4041_v33  ;;  %v4241_v30 = vld [vmem:[#allocation14 + $0x270] sm:$0xf]  ;;  %v4971_v31 = vld [vmem:[#allocation14 + $0x274] sm:$0xf0]  ;;  %v4933_v32 = vld [vmem:[#allocation14 + $0x144] sm:$0xf0] }
 0x153   : > { %1763 = vmatpush.bf16.msra.mxu0 %v3970_v35  ;;  %v4090_v33 = vor.u32 %v4933_v32, %v4089_v29  ;;  %v4153_v34 = vld [vmem:[#allocation14 + $0x1c0] sm:$0xf]  ;;  %v4949_v35 = vld [vmem:[#allocation14 + $0x1c4] sm:$0xf0]  ;;  %v4242_v42 = vor.u32 %v4971_v31, %v4241_v30  ;;  %v4954_v30 = vld [vmem:[#allocation14 + $0x1f4] sm:$0xf] }
 0x154   : > { %v4957_v29 = vld [vmem:[#allocation14 + $0x204] sm:$0xf0]  ;;  %v4179_v31 = vld [vmem:[#allocation14 + $0x1f8] sm:$0xf0] }
 0x155   : > { %1775 = vmatpush.bf16.msrb.mxu1 %v4042_v37  ;;  %v4233_v37 = vld [vmem:[#allocation14 + $0x260] sm:$0xf] }
 0x158   : > { %892 = vrot.lane.b32.xlu2 %v882_v36, %s5491_s23  ;;  %v3961_v36 = vld [vmem:[#allocation14 + $0x40] sm:$0xf] }
 0x159   : > { %v3962_v41 = vor.u32 %v4901_v38, %v3961_v36  ;;  %v3930_v36 = vor.u32 %v4893_v24, %v3929_v23  ;;  %v4969_v38 = vld [vmem:[#allocation14 + $0x264] sm:$0xf0]  ;;  %v4193_v24 = vld [vmem:[#allocation14 + $0x210] sm:$0xf] }
 0x15b   : > { %1764 = vmatpush.bf16.msra.mxu0 %v3962_v41  ;;  %v4154_v41 = vor.u32 %v4949_v35, %v4153_v34  ;;  %v4952_v34 = vld [vmem:[#allocation14 + $0x1e4] sm:$0xf]  ;;  %v4171_v35 = vld [vmem:[#allocation14 + $0x1e8] sm:$0xf0] }
 0x15f   : > { %1765 = vmatpush.bf16.msra.mxu0 %v3954_v58  ;;  %v4967_v58 = vld [vmem:[#allocation14 + $0x254] sm:$0xf0] }
 0x163   : > { %1766 = vmatpush.bf16.msra.mxu0 %v3946_v10 }
 0x1aa   : > { %v889_v44 = vpop.permute.xlu2 %888 }
 0x1ab   : > { %v899_v47 = vsel %vm823_vm5, %v878_v46, %v889_v44  ;;  %v4034_v44 = vor.u32 %v4919_v40, %v4033_v39  ;;  %v4917_v46 = vld [vmem:[#allocation14 + $0xc4] sm:$0xf0]  ;;  %v4002_v39 = vor.u32 %v4911_v28, %v4001_v27  ;;  %v4185_v28 = vld [vmem:[#allocation14 + $0x200] sm:$0xf] }
 0x1ac   : > { %v1261_v40 = vld [vmem:[#allocation5] ss:$2 sm:$0x1]  ;;  %v4186_v32 = vor.u32 %v4957_v29, %v4185_v28  ;;  %v4035_v28 = vld [vmem:[#allocation14 + $0xd8] sm:$0xf0] }
 0x1ad   : > { %1776 = vmatpush.bf16.msrb.mxu1 %v4034_v44  ;;  %v4909_v44 = vld [vmem:[#allocation14 + $0x84] sm:$0xf0]  ;;  %v4934_v29 = vld [vmem:[#allocation14 + $0x154] sm:$0xf] }
 0x1b2   : > { %v893_v45 = vpop.permute.xlu2 %892 }
 0x1b3   : > { %v901_v48 = vsel %vm900_vm9, %v899_v47, %v893_v45  ;;  %v4025_v45 = vld [vmem:[#allocation14 + $0xc0] sm:$0xf]  ;;  %v4113_v47 = vld [vmem:[#allocation14 + $0x170] sm:$0xf] }
 0x1b4   : > { %v4026_v61 = vor.u32 %v4917_v46, %v4025_v45  ;;  %v4906_v45 = vld [vmem:[#allocation14 + $0x74] sm:$0xf]  ;;  %v3987_v46 = vld [vmem:[#allocation14 + $0x78] sm:$0xf0] }
 0x1b5   : > { %v3990_v59 = vor.u32 %v4906_v45, %v3987_v46  ;;  %v4896_v45 = vld [vmem:[#allocation14 + $0x24] sm:$0xf]  ;;  %v3947_v46 = vld [vmem:[#allocation14 + $0x28] sm:$0xf0] }
 0x1b6   : > { %1777 = vmatpush.bf16.msrb.mxu1 %v4026_v61  ;;  %v3979_v61 = vld [vmem:[#allocation14 + $0x68] sm:$0xf0] }
 0x1ba   : > { %1778 = vmatpush.bf16.msrb.mxu1 %v4018_v13  ;;  %v4963_v13 = vld [vmem:[#allocation14 + $0x234] sm:$0xf0] }
 0x1c1   : > { %v897_v49 = vpop.permute.xlu0 %896 }
 0x1c2   : > { %v903_v50 = vsel %vm902_vm10, %v901_v48, %v897_v49  ;;  %v4939_v48 = vld [vmem:[#allocation14 + $0x174] sm:$0xf0]  ;;  %v4177_v49 = vld [vmem:[#allocation14 + $0x1f0] sm:$0xf] }
 0x1c3   : > { %v904_v51 = vpack.c.bf16 %v903_v50, %v903_v50  ;;  %v4955_v50 = vld [vmem:[#allocation14 + $0x1f4] sm:$0xf0]  ;;  %v4114_v54 = vor.u32 %v4939_v48, %v4113_v47  ;;  %v4081_v47 = vld [vmem:[#allocation14 + $0x130] sm:$0xf] }
 0x1c4   : > { %v4178_v55 = vor.u32 %v4955_v50, %v4177_v49  ;;  %v4931_v48 = vld [vmem:[#allocation14 + $0x134] sm:$0xf0]  ;;  %v5759_v49 = vpack.c.bf16 %v1261_v40, %v1261_v40  ;;  %v4065_v40 = vld [vmem:[#allocation14 + $0x110] sm:$0xf] }
 0x1c5   : > { %1001 = vmatmul.bf16.vlgmr.msra.gmra.mxu1 %v904_v51  ;;  %1787 = vmatpush.bf16.msrb.mxu3 %v4114_v54  ;;  %v4082_v50 = vor.u32 %v4931_v48, %v4081_v47  ;;  %v3994_v54 = vor.u32 %v4909_v44, %v3993_v43  ;;  %v4943_v44 = vld [vmem:[#allocation14 + $0x194] sm:$0xf0]  ;;  %v3950_v48 = vor.u32 %v4896_v45, %v3947_v46  ;;  %v4966_v45 = vld [vmem:[#allocation14 + $0x254] sm:$0xf]  ;;  %v4227_v46 = vld [vmem:[#allocation14 + $0x258] sm:$0xf0] }
 0x1c6   : > { %1800 = vmatpush.bf16.msra.mxu2 %v4178_v55 }
 0x1d4   : > { %v1015_v52 = vpop.f32.mrf.mxu2 }
 0x1dc   : > { %v1017_v53 = vpop.f32.mrf.mxu2 }
 0x242   : > { %v1002_v3 = vpop.f32.mrf.mxu1 }
 0x243   : > { %v1003_v4 = vadd.f32 %v5234_v1, %v1002_v3  ;;  %v4105_v1 = vld [vmem:[#allocation14 + $0x160] sm:$0xf]  ;;  %v4937_v3 = vld [vmem:[#allocation14 + $0x164] sm:$0xf0] }
 0x245   : > { %v1016_v7 = vadd.f32 %v1015_v52, %v1003_v4  ;;  %v4169_v4 = vld [vmem:[#allocation14 + $0x1e0] sm:$0xf] }
 0x246   : > { %v4170_v9 = vor.u32 %v4953_v5, %v4169_v4  ;;  %v4217_v5 = vld [vmem:[#allocation14 + $0x240] sm:$0xf] }
 0x247   : > { %vm1019_vm12 = vcmp.ge.f32.partialorder %v1016_v7, 0.0  ;;  %v1020_v8 = vmul.f32 0.2, %v1016_v7 }
 0x248   : > { %1801 = vmatpush.bf16.msra.mxu2 %v4170_v9  ;;  %v3971_v9 = vld [vmem:[#allocation14 + $0x58] sm:$0xf0] }
 0x249   : > { %v1021_v11 = vsel %vm1019_vm12, %v1016_v7, %v1020_v8  ;;  %v4106_v8 = vor.u32 %v4937_v3, %v4105_v1  ;;  %v4137_v1 = vld [vmem:[#allocation14 + $0x1a0] sm:$0xf]  ;;  %vm3175_vm12 = vcmask 31744  }
 0x24a   : > { %1025 = vst.msk [vmem:[#allocation4 + $0x2] sm:$0xf] %vm1024_vm13, %v1021_v11  ;;  %v1004_v12 = vpop.f32.mrf.mxu1  ;;  %v3937_v11 = vld [vmem:[#allocation14 + $0x10] sm:$0xf] }
 0x24b   : > { %v4895_v12 = vld [vmem:[#allocation14 + $0x14] sm:$0xf0]  ;;  %1788 = vmatpush.bf16.msrb.mxu3 %v4106_v8  ;;  %v4902_v8 = vld [vmem:[#allocation14 + $0x54] sm:$0xf] }
 0x24c   : > { %v3938_v22 = vor.u32 %v4895_v12, %v3937_v11  ;;  %v4209_v11 = vld [vmem:[#allocation14 + $0x230] sm:$0xf]  ;;  %v3974_v12 = vor.u32 %v4902_v8, %v3971_v9  ;;  %v4892_v8 = vld [vmem:[#allocation14 + $0x4] sm:$0xf] }
 0x24e   : > { %1767 = vmatpush.bf16.msra.mxu0 %v3938_v22 }
 0x251   : > { %v1035_v15 = vld [vmem:[#allocation4 + $0x4] ss:$2 sm:$0x3]  ;;  %v1029_v16 = vld [vmem:[#allocation4 + $0x1] ss:$2 sm:$0x3] }
 0x252   : > { %v1048_v17 = vpack.c.bf16 %v1035_v15, %v1035_v15  ;;  %v1033_v18 = vld [vmem:[#allocation4 + $0x3] ss:$2 sm:$0x3]  ;;  %v1027_v52 = vld [vmem:[#allocation4] ss:$2 sm:$0x3]  ;;  %1768 = vmatpush.bf16.msra.mxu0 %v3930_v36  ;;  %v4174_v36 = vor.u32 %v4952_v34, %v4171_v35 }
 0x253   : > { %v5213_v19 = vpack.i.bf16 %v1033_v18, %v1029_v16  ;;  %v1031_v53 = vld [vmem:[#allocation4 + $0x2] ss:$2 sm:$0x3]  ;;  %v4913_v15 = vld [vmem:[#allocation14 + $0xa4] sm:$0xf0] }
 0x254   : > { %3926 = vmatmul.msk.bf16.vlgmr.msrb.gmra.mxu0 %vm900_vm9, %v1048_v17  ;;  %v4097_v16 = vld [vmem:[#allocation14 + $0x150] sm:$0xf]  ;;  %v4935_v17 = vld [vmem:[#allocation14 + $0x154] sm:$0xf0]  ;;  %v4010_v25 = vor.u32 %v4913_v15, %v4009_v14  ;;  %v4900_v14 = vld [vmem:[#allocation14 + $0x44] sm:$0xf] }
 0x255   : > { %5214 = vrot.lane.b32.xlu1 %v5213_v19, %s5491_s23  ;;  %v4161_v18 = vld [vmem:[#allocation14 + $0x1d0] sm:$0xf]  ;;  %v4951_v19 = vld [vmem:[#allocation14 + $0x1d4] sm:$0xf0]  ;;  %v4098_v20 = vor.u32 %v4935_v17, %v4097_v16  ;;  %v3963_v15 = vld [vmem:[#allocation14 + $0x48] sm:$0xf0]  ;;  %v4210_v16 = vor.u32 %v4963_v13, %v4209_v11 }
 0x256   : > { %v4162_v21 = vor.u32 %v4951_v19, %v4161_v18  ;;  %1779 = vmatpush.bf16.msrb.mxu1 %v4010_v25  ;;  %1813 = vmatpush.bf16.msrb.mxu0 %v4242_v42  ;;  %v4201_v17 = vld [vmem:[#allocation14 + $0x220] sm:$0xf]  ;;  %v3966_v18 = vor.u32 %v4900_v14, %v3963_v15  ;;  %v4961_v19 = vld [vmem:[#allocation14 + $0x224] sm:$0xf0]  ;;  %v4959_v25 = vld [vmem:[#allocation14 + $0x214] sm:$0xf0] }
 0x257   : > { %1789 = vmatpush.bf16.msrb.mxu3 %v4098_v20  ;;  %v4898_v20 = vld [vmem:[#allocation14 + $0x34] sm:$0xf]  ;;  %v4202_v22 = vor.u32 %v4961_v19, %v4201_v17  ;;  %v4194_v27 = vor.u32 %v4959_v25, %v4193_v24  ;;  %v4129_v42 = vld [vmem:[#allocation14 + $0x190] sm:$0xf]  ;;  %v3931_v11 = vld [vmem:[#allocation14 + $0x8] sm:$0xf0] }
 0x258   : > { %1802 = vmatpush.bf16.msra.mxu2 %v4162_v21  ;;  %v3955_v21 = vld [vmem:[#allocation14 + $0x38] sm:$0xf0]  ;;  %v4130_v47 = vor.u32 %v4943_v44, %v4129_v42  ;;  %v3934_v13 = vor.u32 %v4892_v8, %v3931_v11  ;;  %v4920_v14 = vld [vmem:[#allocation14 + $0xe4] sm:$0xf]  ;;  %v4043_v15 = vld [vmem:[#allocation14 + $0xe8] sm:$0xf0] }
 0x259   : > { %v3958_v23 = vor.u32 %v4898_v20, %v3955_v21  ;;  %v4046_v17 = vor.u32 %v4920_v14, %v4043_v15  ;;  %v4944_v19 = vld [vmem:[#allocation14 + $0x1a4] sm:$0xf]  ;;  %v4139_v20 = vld [vmem:[#allocation14 + $0x1a8] sm:$0xf0]  ;;  %v4243_v24 = vld [vmem:[#allocation14 + $0x278] sm:$0xf0] }
 0x25a   : > { %1780 = vmatpush.bf16.msrb.mxu1 %v4002_v39  ;;  %v4918_v25 = vld [vmem:[#allocation14 + $0xd4] sm:$0xf]  ;;  %v4131_v34 = vld [vmem:[#allocation14 + $0x198] sm:$0xf0]  ;;  %v4968_v35 = vld [vmem:[#allocation14 + $0x264] sm:$0xf] }
 0x25b   : > { %1790 = vmatpush.bf16.msrb.mxu3 %v4090_v33  ;;  %v4182_v33 = vor.u32 %v4954_v30, %v4179_v31  ;;  %v4099_v30 = vld [vmem:[#allocation14 + $0x158] sm:$0xf0]  ;;  %v4038_v31 = vor.u32 %v4918_v25, %v4035_v28  ;;  %v4091_v42 = vld [vmem:[#allocation14 + $0x148] sm:$0xf0]  ;;  %v4960_v11 = vld [vmem:[#allocation14 + $0x224] sm:$0xf] }
 0x25c   : > { %1803 = vmatpush.bf16.msra.mxu2 %v4154_v41  ;;  %v4927_v41 = vld [vmem:[#allocation14 + $0x114] sm:$0xf0]  ;;  %v4123_v44 = vld [vmem:[#allocation14 + $0x188] sm:$0xf0]  ;;  %v4003_v8 = vld [vmem:[#allocation14 + $0x98] sm:$0xf0] }
 0x25d   : > { %v4066_v43 = vor.u32 %v4927_v41, %v4065_v40  ;;  %v4932_v41 = vld [vmem:[#allocation14 + $0x144] sm:$0xf]  ;;  %v5235_v14 = vld [vmem:[%s5865_s6] ss:$0 sm:$0xff] }
 0x25e   : > { %1781 = vmatpush.bf16.msrb.mxu1 %v3994_v54  ;;  %v4925_v54 = vld [vmem:[#allocation14 + $0x104] sm:$0xf0] }
 0x25f   : > { %1791 = vmatpush.bf16.msrb.mxu3 %v4082_v50  ;;  %v4948_v50 = vld [vmem:[#allocation14 + $0x1c4] sm:$0xf] }
 0x262   : > { %1826 = vmatpush.bf16.msra.mxu1 %v3990_v59 }
 0x264   : > { %1769 = vmatmul.bf16.vlgmr.msra.gmra.mxu0 %v5759_v49 }
 0x2c7   : > { %v5215_v51 = vpop.permute.xlu1 %5214 }
 0x2c8   : > { %v5217_v56 = vunpack.i.h.bf16 %v5215_v51  ;;  %v5216_v57 = vunpack.i.l.bf16 %v5215_v51  ;;  %v4145_v51 = vld [vmem:[#allocation14 + $0x1b0] sm:$0xf] }
 0x2ca   : > { %v1044_v0 = vsel %vm900_vm9, %v1027_v52, %v5216_v57  ;;  %v1045_v2 = vsel %vm900_vm9, %v1031_v53, %v5217_v56  ;;  %v4947_v52 = vld [vmem:[#allocation14 + $0x1b4] sm:$0xf0]  ;;  %v4225_v53 = vld [vmem:[#allocation14 + $0x250] sm:$0xf]  ;;  %v4234_v57 = vor.u32 %v4969_v38, %v4233_v37  ;;  %v4950_v37 = vld [vmem:[#allocation14 + $0x1d4] sm:$0xf] }
 0x2cb   : > { %v1046_v6 = vpack.c.bf16 %v1044_v0, %v1044_v0  ;;  %v1047_v7 = vpack.c.bf16 %v1045_v2, %v1045_v2  ;;  %v4146_v55 = vor.u32 %v4947_v52, %v4145_v51  ;;  %v4074_v0 = vor.u32 %v4929_v63, %v4073_v62  ;;  %v4945_v2 = vld [vmem:[#allocation14 + $0x1a4] sm:$0xf0]  ;;  %v4163_v38 = vld [vmem:[#allocation14 + $0x1d8] sm:$0xf0]  ;;  %v4155_v51 = vld [vmem:[#allocation14 + $0x1c8] sm:$0xf0] }
 0x2cc   : > { %v4138_v3 = vor.u32 %v4945_v2, %v4137_v1  ;;  %1814 = vmatpush.bf16.msrb.mxu0 %v4234_v57  ;;  %v4226_v4 = vor.u32 %v4967_v58, %v4225_v53  ;;  %v4166_v39 = vor.u32 %v4950_v37, %v4163_v38  ;;  %v4158_v52 = vor.u32 %v4948_v50, %v4155_v51  ;;  %v4057_v53 = vld [vmem:[#allocation14 + $0x100] sm:$0xf]  ;;  %v4941_v57 = vld [vmem:[#allocation14 + $0x184] sm:$0xf0]  ;;  %v3939_v62 = vld [vmem:[#allocation14 + $0x18] sm:$0xf0] }
 0x2cd   : > { %1224 = vmatmul.bf16.vlgmr.msra.gmra.mxu3 %v1046_v6  ;;  %1237 = vmatmul.bf16.vlgmr.msrb.gmra.mxu2 %v1047_v7  ;;  %v3982_v6 = vor.u32 %v4904_v60, %v3979_v61  ;;  %v4965_v7 = vld [vmem:[#allocation14 + $0x244] sm:$0xf0]  ;;  %v1269_v58 = vld [vmem:[#allocation5 + $0x4] ss:$2 sm:$0x1]  ;;  %v4230_v51 = vor.u32 %v4966_v45, %v4227_v46  ;;  %v4978_v46 = vld [vmem:[#allocation15 + $0x30] sm:$0xff] }
 0x2ce   : > { %1804 = vmatpush.bf16.msra.mxu2 %v4146_v55  ;;  %1792 = vmatpush.bf16.msrb.mxu3 %v4074_v0  ;;  %v4218_v10 = vor.u32 %v4965_v7, %v4217_v5  ;;  %v4121_v55 = vld [vmem:[#allocation14 + $0x180] sm:$0xf]  ;;  %v5762_v60 = vpack.c.bf16 %v1269_v58, %v1269_v58  ;;  %v4894_v61 = vld [vmem:[#allocation14 + $0x14] sm:$0xf]  ;;  %v4051_v0 = vld [vmem:[#allocation14 + $0xf8] sm:$0xf0] }
 0x2cf   : > { %1827 = vmatpush.bf16.msra.mxu1 %v3982_v6  ;;  %v4122_v59 = vor.u32 %v4941_v57, %v4121_v55  ;;  %v4922_v63 = vld [vmem:[#allocation14 + $0xf4] sm:$0xf]  ;;  %v3942_v1 = vor.u32 %v4894_v61, %v3939_v62  ;;  %v4147_v7 = vld [vmem:[#allocation14 + $0x1b8] sm:$0xf0]  ;;  %v4235_v37 = vld [vmem:[#allocation14 + $0x268] sm:$0xf0] }
 0x2d0   : > { %1815 = vmatpush.bf16.msrb.mxu0 %v4226_v4  ;;  %v4938_v2 = vld [vmem:[#allocation14 + $0x174] sm:$0xf]  ;;  %v4054_v4 = vor.u32 %v4922_v63, %v4051_v0  ;;  %v4916_v38 = vld [vmem:[#allocation14 + $0xc4] sm:$0xf]  ;;  %v4238_v40 = vor.u32 %v4968_v35, %v4235_v37  ;;  %v4219_v58 = vld [vmem:[#allocation14 + $0x248] sm:$0xf0] }
 0x2d1   : > { %v5757_v26 = vpop.f32.mrf.mxu0  ;;  %v4946_v6 = vld [vmem:[#allocation14 + $0x1b4] sm:$0xf]  ;;  %v4964_v57 = vld [vmem:[#allocation14 + $0x244] sm:$0xf]  ;;  %v4011_v63 = vld [vmem:[#allocation14 + $0xa8] sm:$0xf0] }
 0x2d2   : > { %1805 = vmatpush.bf16.msra.mxu2 %v4138_v3  ;;  %1793 = vmatpush.bf16.msrb.mxu3 %v4066_v43  ;;  %v4115_v3 = vld [vmem:[#allocation14 + $0x178] sm:$0xf0]  ;;  %v4150_v9 = vor.u32 %v4946_v6, %v4147_v7  ;;  %v4940_v43 = vld [vmem:[#allocation14 + $0x184] sm:$0xf]  ;;  %v4222_v61 = vor.u32 %v4964_v57, %v4219_v58  ;;  %v4075_v0 = vld [vmem:[#allocation14 + $0x128] sm:$0xf0] }
 0x2d3   : > { %1828 = vmatpush.bf16.msra.mxu1 %v3974_v12  ;;  %v4118_v5 = vor.u32 %v4938_v2, %v4115_v3  ;;  %v4126_v50 = vor.u32 %v4940_v43, %v4123_v44  ;;  %v4912_v62 = vld [vmem:[#allocation14 + $0xa4] sm:$0xf]  ;;  %v4962_v2 = vld [vmem:[#allocation14 + $0x234] sm:$0xf]  ;;  %v4211_v3 = vld [vmem:[#allocation14 + $0x238] sm:$0xf0] }
 0x2d4   : > { %1816 = vmatpush.bf16.msrb.mxu0 %v4218_v10  ;;  %v1263_v10 = vld [vmem:[#allocation5 + $0x1] ss:$2 sm:$0x1]  ;;  %v4910_v6 = vld [vmem:[#allocation14 + $0x94] sm:$0xf]  ;;  %v4214_v7 = vor.u32 %v4962_v2, %v4211_v3  ;;  %v4983_v57 = vld [vmem:[#allocation15 + $0x58] sm:$0xff] }
 0x2d5   : > { %v5765_v12 = vpack.c.bf16 %v1263_v10, %v1263_v10  ;;  %v4067_v10 = vld [vmem:[#allocation14 + $0x118] sm:$0xf0]  ;;  %v4006_v15 = vor.u32 %v4910_v6, %v4003_v8  ;;  %v4972_v58 = vld [vmem:[#allocation15] sm:$0xff]  ;;  %v5010_v3 = vld [vmem:[#allocation15 + $0x130] sm:$0xff] }
 0x2d6   : > { %1806 = vmatpush.bf16.msra.mxu2 %v4130_v47  ;;  %v4992_v2 = vld [vmem:[#allocation15 + $0xa0] sm:$0xff]  ;;  %v5009_v6 = vld [vmem:[#allocation15 + $0x128] sm:$0xff] }
 0x2d7   : > { %1829 = vmatpush.bf16.msra.mxu1 %v3966_v18  ;;  %v4107_v18 = vld [vmem:[#allocation14 + $0x168] sm:$0xf0] }
 0x2d8   : > { %1817 = vmatpush.bf16.msrb.mxu0 %v4210_v16  ;;  %v4936_v16 = vld [vmem:[#allocation14 + $0x164] sm:$0xf]  ;;  %1782 = vmatmul.bf16.vlgmr.msrb.gmra.mxu1 %v5765_v12 }
 0x2d9   : > { %v1253_v56 = vpop.f32.mrf.mxu0  ;;  %v4110_v21 = vor.u32 %v4936_v16, %v4107_v18 }
 0x2da   : > { %v4058_v56 = vor.u32 %v4925_v54, %v4057_v53  ;;  %1807 = vmatpush.bf16.msra.mxu2 %v4122_v59  ;;  %v4019_v53 = vld [vmem:[#allocation14 + $0xb8] sm:$0xf0]  ;;  %v4930_v54 = vld [vmem:[#allocation14 + $0x134] sm:$0xf] }
 0x2db   : > { %1830 = vmatpush.bf16.msra.mxu1 %v3958_v23  ;;  %v4970_v23 = vld [vmem:[#allocation14 + $0x274] sm:$0xf] }
 0x2dc   : > { %1818 = vmatpush.bf16.msrb.mxu0 %v4202_v22  ;;  %1794 = vmatpush.bf16.msrb.mxu3 %v4058_v56  ;;  %v4142_v22 = vor.u32 %v4944_v19, %v4139_v20  ;;  %v4083_v56 = vld [vmem:[#allocation14 + $0x138] sm:$0xf0]  ;;  %v3995_v19 = vld [vmem:[#allocation14 + $0x88] sm:$0xf0]  ;;  %v4924_v20 = vld [vmem:[#allocation14 + $0x104] sm:$0xf] }
 0x2dd   : > { %v4086_v59 = vor.u32 %v4930_v54, %v4083_v56  ;;  %v4984_v54 = vld [vmem:[#allocation15 + $0x60] sm:$0xff]  ;;  %v4994_v56 = vld [vmem:[#allocation15 + $0xb0] sm:$0xff] }
 0x2de   : > { %1852 = vmatpush.bf16.msrb.mxu2 %v4118_v5 }
 0x2df   : > { %1831 = vmatpush.bf16.msra.mxu1 %v3950_v48  ;;  %v4094_v48 = vor.u32 %v4932_v41, %v4091_v42 }
 0x2e0   : > { %1819 = vmatpush.bf16.msrb.mxu0 %v4194_v27  ;;  %1839 = vmatpush.bf16.msra.mxu3 %v4054_v4  ;;  %v4246_v27 = vor.u32 %v4970_v23, %v4243_v24  ;;  %v4014_v4 = vor.u32 %v4912_v62, %v4011_v63  ;;  %v4195_v23 = vld [vmem:[#allocation14 + $0x218] sm:$0xf0] }
 0x2e2   : > { %1853 = vmatpush.bf16.msrb.mxu2 %v4110_v21  ;;  %v4059_v21 = vld [vmem:[#allocation14 + $0x108] sm:$0xf0] }
 0x2e3   : > { %1832 = vmatpush.bf16.msra.mxu1 %v3942_v1  ;;  %v4928_v1 = vld [vmem:[#allocation14 + $0x124] sm:$0xf] }
 0x2e4   : > { %1820 = vmatpush.bf16.msrb.mxu0 %v4186_v32  ;;  %1840 = vmatpush.bf16.msra.mxu3 %v4046_v17  ;;  %v4102_v32 = vor.u32 %v4934_v29, %v4099_v30  ;;  %v4078_v5 = vor.u32 %v4928_v1, %v4075_v0  ;;  %v4908_v17 = vld [vmem:[#allocation14 + $0x84] sm:$0xf] }
 0x2e5   : > { %v3998_v25 = vor.u32 %v4908_v17, %v3995_v19  ;;  %v5007_v17 = vld [vmem:[#allocation15 + $0x118] sm:$0xff]  ;;  %v5001_v19 = vld [vmem:[#allocation15 + $0xe8] sm:$0xff] }
 0x2e6   : > { %1854 = vmatpush.bf16.msrb.mxu2 %v4102_v32  ;;  %v4187_v32 = vld [vmem:[#allocation14 + $0x208] sm:$0xf0] }
 0x2e7   : > { %1821 = vmatmul.bf16.vlgmr.msrb.gmra.mxu0 %v5762_v60  ;;  %1833 = vmatpush.bf16.msra.mxu1 %v3934_v13  ;;  %v4203_v13 = vld [vmem:[#allocation14 + $0x228] sm:$0xf0] }
 0x2e8   : > { %1865 = vmatpush.bf16.msra.mxu0 %v4182_v33  ;;  %v4942_v33 = vld [vmem:[#allocation14 + $0x194] sm:$0xf]  ;;  %1841 = vmatpush.bf16.msra.mxu3 %v4038_v31  ;;  %v4206_v18 = vor.u32 %v4960_v11, %v4203_v13  ;;  %v4956_v31 = vld [vmem:[#allocation14 + $0x204] sm:$0xf] }
 0x2e9   : > { %v4990_v11 = vld [vmem:[#allocation15 + $0x90] sm:$0xff]  ;;  %v5008_v13 = vld [vmem:[#allocation15 + $0x120] sm:$0xff] }
 0x2ea   : > { %1855 = vmatpush.bf16.msrb.mxu2 %v4094_v48  ;;  %1834 = vmatmul.bf16.vlgmr.msra.gmra.mxu1 %v5759_v49  ;;  %v4977_v48 = vld [vmem:[#allocation15 + $0x28] sm:$0xff] }
 0x2eb   : > { %1878 = vmatpush.bf16.msrb.mxu1 %v4246_v27  ;;  %v4062_v27 = vor.u32 %v4924_v20, %v4059_v21  ;;  %v5017_v20 = vld [vmem:[#allocation15 + $0x168] sm:$0xff]  ;;  %v1925_v21 = vld [vmem:[#allocation6] sm:$0x3] }
 0x2ec   : > { %1866 = vmatpush.bf16.msra.mxu0 %v4174_v36  ;;  %v4134_v36 = vor.u32 %v4942_v33, %v4131_v34  ;;  %v4190_v34 = vor.u32 %v4956_v31, %v4187_v32  ;;  %v5015_v31 = vld [vmem:[#allocation15 + $0x158] sm:$0xff] }
 0x2ed   : > { %v1926_v32 = vld [vmem:[#allocation6 + $0x8] sm:$0x3] }
 0x2ee   : > { %1856 = vmatpush.bf16.msrb.mxu2 %v4086_v59  ;;  %v4993_v59 = vld [vmem:[#allocation15 + $0xa8] sm:$0xff] }
 0x2ef   : > { %1879 = vmatpush.bf16.msrb.mxu1 %v4238_v40  ;;  %v4979_v40 = vld [vmem:[#allocation15 + $0x38] sm:$0xff] }
 0x2f0   : > { %1867 = vmatpush.bf16.msra.mxu0 %v4166_v39  ;;  %v4027_v39 = vld [vmem:[#allocation14 + $0xc8] sm:$0xf0] }
 0x2f1   : > { %v4030_v47 = vor.u32 %v4916_v38, %v4027_v39  ;;  %v5773_v39 = vpop.f32.mrf.mxu0 }
 0x2f2   : > { %1857 = vmatpush.bf16.msrb.mxu2 %v4078_v5  ;;  %v4991_v5 = vld [vmem:[#allocation15 + $0x98] sm:$0xff] }
 0x2f3   : > { %1842 = vmatpush.bf16.msra.mxu3 %v4030_v47  ;;  %1880 = vmatpush.bf16.msrb.mxu1 %v4230_v51  ;;  %v4986_v47 = vld [vmem:[#allocation15 + $0x70] sm:$0xff]  ;;  %v4985_v51 = vld [vmem:[#allocation15 + $0x68] sm:$0xff] }
 0x2f4   : > { %1868 = vmatpush.bf16.msra.mxu0 %v4158_v52  ;;  %v4914_v52 = vld [vmem:[#allocation14 + $0xb4] sm:$0xf] }
 0x2f5   : > { %v4022_v55 = vor.u32 %v4914_v52, %v4019_v53  ;;  %v4974_v52 = vld [vmem:[#allocation15 + $0x10] sm:$0xff]  ;;  %v4995_v53 = vld [vmem:[#allocation15 + $0xb8] sm:$0xff] }
 0x2f7   : > { %1843 = vmatpush.bf16.msra.mxu3 %v4022_v55  ;;  %1881 = vmatpush.bf16.msrb.mxu1 %v4222_v61  ;;  %v4973_v55 = vld [vmem:[#allocation15 + $0x8] sm:$0xff]  ;;  %v4982_v61 = vld [vmem:[#allocation15 + $0x50] sm:$0xff] }
 0x2f8   : > { %1869 = vmatpush.bf16.msra.mxu0 %v4150_v9  ;;  %v4926_v9 = vld [vmem:[#allocation14 + $0x114] sm:$0xf] }
 0x2f9   : > { %v4070_v16 = vor.u32 %v4926_v9, %v4067_v10  ;;  %v1772_v43 = vpop.f32.mrf.mxu0  ;;  %v5003_v9 = vld [vmem:[#allocation15 + $0xf8] sm:$0xff] }
 0x2fa   : > { %v5019_v10 = vld [vmem:[#allocation15 + $0x178] sm:$0xff]  ;;  %v5024_v43 = vld [vmem:[#allocation15 + $0x1a0] sm:$0xff] }
 0x2fb   : > { %1844 = vmatpush.bf16.msra.mxu3 %v4014_v4  ;;  %1882 = vmatpush.bf16.msrb.mxu1 %v4214_v7  ;;  %v4981_v4 = vld [vmem:[#allocation15 + $0x48] sm:$0xff]  ;;  %v4980_v7 = vld [vmem:[#allocation15 + $0x40] sm:$0xff] }
 0x2fc   : > { %1870 = vmatpush.bf16.msra.mxu0 %v4142_v22  ;;  %v4958_v22 = vld [vmem:[#allocation14 + $0x214] sm:$0xf]  ;;  %1858 = vmatpush.bf16.msrb.mxu2 %v4070_v16  ;;  %v4989_v16 = vld [vmem:[#allocation15 + $0x88] sm:$0xff] }
 0x2fd   : > { %v4198_v29 = vor.u32 %v4958_v22, %v4195_v23  ;;  %v1959_v22 = vpack.c.bf16 %v1925_v21, %v1925_v21  ;;  %v4988_v23 = vld [vmem:[#allocation15 + $0x80] sm:$0xff]  ;;  %v5047_v21 = vld [vmem:[#allocation15 + $0x258] sm:$0xff] }
 0x2ff   : > { %1845 = vmatpush.bf16.msra.mxu3 %v4006_v15  ;;  %1883 = vmatpush.bf16.msrb.mxu1 %v4206_v18  ;;  %v5018_v15 = vld [vmem:[#allocation15 + $0x170] sm:$0xff] }
 0x300   : > { %1871 = vmatpush.bf16.msra.mxu0 %v4134_v36  ;;  %1859 = vmatpush.bf16.msrb.mxu2 %v4062_v27  ;;  %v5016_v27 = vld [vmem:[#allocation15 + $0x160] sm:$0xff] }
 0x303   : > { %1846 = vmatpush.bf16.msra.mxu3 %v3998_v25  ;;  %1884 = vmatpush.bf16.msrb.mxu1 %v4198_v29  ;;  %v5000_v25 = vld [vmem:[#allocation15 + $0xe0] sm:$0xff]  ;;  %v5026_v29 = vld [vmem:[#allocation15 + $0x1b0] sm:$0xff] }
 0x304   : > { %1872 = vmatpush.bf16.msra.mxu0 %v4126_v50  ;;  %v4976_v50 = vld [vmem:[#allocation15 + $0x20] sm:$0xff] }
 0x307   : > { %1885 = vmatpush.bf16.msrb.mxu1 %v4190_v34  ;;  %v1960_v34 = vpack.c.bf16 %v1926_v32, %v1926_v32 }
 0x308   : > { %2639 = vmatpush.bf16.msrb.mxu0 %v4995_v53  ;;  %v5035_v53 = vld [vmem:[#allocation15 + $0x1f8] sm:$0xff] }
 0x30a   : > { %1886 = vmatmul.bf16.vlgmr.msrb.gmra.mxu1 %v5762_v60  ;;  %v4975_v60 = vld [vmem:[#allocation15 + $0x18] sm:$0xff] }
 0x30b   : > { %2652 = vmatpush.bf16.msra.mxu1 %v5003_v9 }
 0x30c   : > { %2640 = vmatpush.bf16.msrb.mxu0 %v4994_v56  ;;  %v5022_v56 = vld [vmem:[#allocation15 + $0x190] sm:$0xff] }
 0x310   : > { %2641 = vmatpush.bf16.msrb.mxu0 %v4993_v59 }
 0x314   : > { %2642 = vmatpush.bf16.msrb.mxu0 %v4992_v2 }
 0x318   : > { %2643 = vmatpush.bf16.msrb.mxu0 %v4991_v5 }
 0x31c   : > { %2644 = vmatpush.bf16.msrb.mxu0 %v4990_v11 }
 0x320   : > { %2645 = vmatpush.bf16.msrb.mxu0 %v4989_v16 }
 0x324   : > { %2646 = vmatpush.bf16.msrb.mxu0 %v4988_v23 }
 0x350   : > { %v1225_v24 = vpop.f32.mrf.mxu3  ;;  %v1238_v49 = vpop.f32.mrf.mxu2 }
 0x351   : > { %v1226_v28 = vadd.f32 %v5235_v14, %v1225_v24  ;;  %v5002_v14 = vld [vmem:[#allocation15 + $0xf0] sm:$0xff] }
 0x352   : > { %2653 = vmatpush.bf16.msra.mxu1 %v5002_v14  ;;  %v5006_v24 = vld [vmem:[#allocation15 + $0x110] sm:$0xff]  ;;  %v5048_v14 = vld [vmem:[#allocation15 + $0x260] sm:$0xff] }
 0x353   : > { %v1239_v30 = vadd.f32 %v1238_v49, %v1226_v28  ;;  %v5027_v49 = vld [vmem:[#allocation15 + $0x1b8] sm:$0xff]  ;;  %v5005_v28 = vld [vmem:[#allocation15 + $0x108] sm:$0xff] }
 0x355   : > { %v1252_v33 = vadd.f32 %v5757_v26, %v1239_v30  ;;  %v4987_v26 = vld [vmem:[#allocation15 + $0x78] sm:$0xff]  ;;  %v5779_v63 = vpop.f32.mrf.mxu1 }
 0x356   : > { %2654 = vmatpush.bf16.msra.mxu1 %v5001_v19  ;;  %v4999_v30 = vld [vmem:[#allocation15 + $0xd8] sm:$0xff] }
 0x357   : > { %vm1255_vm14 = vcmp.ge.f32.partialorder %v1252_v33, 0.0  ;;  %v1256_v35 = vmul.f32 0.2, %v1252_v33 }
 0x358   : > { %v1227_v36 = vpop.f32.mrf.mxu3  ;;  %v1240_v37 = vpop.f32.mrf.mxu2 }
 0x359   : > { %v1257_v38 = vsel %vm1255_vm14, %v1252_v33, %v1256_v35  ;;  %v5004_v35 = vld [vmem:[#allocation15 + $0x100] sm:$0xff]  ;;  %v5025_v36 = vld [vmem:[#allocation15 + $0x1a8] sm:$0xff]  ;;  %v5043_v37 = vld [vmem:[#allocation15 + $0x238] sm:$0xff] }
 0x35a   : > { %1259 = vst [vmem:[#allocation5 + $0x2] sm:$0x3] %v1257_v38  ;;  %2655 = vmatpush.bf16.msra.mxu1 %v5000_v25  ;;  %v5788_v38 = vld [vmem:[%s5867_s8] sm:$0x3] }
 0x35d   : > { %v1785_v0 = vpop.f32.mrf.mxu1 }
 0x35e   : > { %2656 = vmatpush.bf16.msra.mxu1 %v4999_v30  ;;  %v5039_v0 = vld [vmem:[#allocation15 + $0x218] sm:$0xff]  ;;  %v5029_v30 = vld [vmem:[#allocation15 + $0x1c8] sm:$0xff] }
 0x361   : > { %v1265_v41 = vld [vmem:[#allocation5 + $0x2] ss:$2 sm:$0x1]  ;;  %v1267_v42 = vld [vmem:[#allocation5 + $0x3] ss:$2 sm:$0x1] }
 0x362   : > { %v1272_v44 = vpack.c.bf16 %v1265_v41, %v1265_v41  ;;  %v1273_v45 = vpack.c.bf16 %v1267_v42, %v1267_v42  ;;  %v5014_v41 = vld [vmem:[#allocation15 + $0x150] sm:$0xff]  ;;  %v1757_v42 = vperm.slane %v5788_v38, 0 }
 0x364   : > { %1795 = vmatmul.bf16.vlgmr.msrb.gmra.mxu3 %v1272_v44  ;;  %1808 = vmatmul.bf16.vlgmr.msra.gmra.mxu2 %v1273_v45  ;;  %v5777_v62 = vpop.f32.mrf.mxu0 }
 0x365   : > { %1873 = vmatmul.bf16.vlgmr.msra.gmra.mxu0 %v1273_v45  ;;  %2613 = vmatpush.bf16.msrb.mxu3 %v4979_v40  ;;  %v4998_v40 = vld [vmem:[#allocation15 + $0xd0] sm:$0xff]  ;;  %v4997_v45 = vld [vmem:[#allocation15 + $0xc8] sm:$0xff] }
 0x366   : > { %2626 = vmatpush.bf16.msra.mxu2 %v4987_v26  ;;  %2691 = vmatpush.bf16.msra.mxu0 %v5027_v49  ;;  %v5013_v26 = vld [vmem:[#allocation15 + $0x148] sm:$0xff] }
 0x367   : > { %v5781_v8 = vpop.f32.mrf.mxu1  ;;  %2657 = vmatpush.bf16.msra.mxu1 %v4998_v40 }
 0x369   : > { %2614 = vmatpush.bf16.msrb.mxu3 %v4978_v46 }
 0x36a   : > { %2627 = vmatpush.bf16.msra.mxu2 %v4986_v47  ;;  %2692 = vmatpush.bf16.msra.mxu0 %v5026_v29  ;;  %v1771_v47 = vadd.f32 %v5773_v39, %v1757_v42  ;;  %v5028_v42 = vld [vmem:[#allocation15 + $0x1c0] sm:$0xff] }
 0x36b   : > { %2658 = vmatpush.bf16.msra.mxu1 %v4997_v45 }
 0x36c   : > { %v1824_v1 = vpop.f32.mrf.mxu0 }
 0x36d   : > { %2615 = vmatpush.bf16.msrb.mxu3 %v4977_v48  ;;  %v5021_v1 = vld [vmem:[#allocation15 + $0x188] sm:$0xff] }
 0x36e   : > { %2628 = vmatpush.bf16.msra.mxu2 %v4985_v51  ;;  %2693 = vmatpush.bf16.msra.mxu0 %v5025_v36  ;;  %v4996_v51 = vld [vmem:[#allocation15 + $0xc0] sm:$0xff] }
 0x36f   : > { %v1837_v18 = vpop.f32.mrf.mxu1  ;;  %2659 = vmatpush.bf16.msra.mxu1 %v4996_v51 }
 0x371   : > { %2616 = vmatpush.bf16.msrb.mxu3 %v4976_v50  ;;  %v5023_v50 = vld [vmem:[#allocation15 + $0x198] sm:$0xff] }
 0x372   : > { %2629 = vmatpush.bf16.msra.mxu2 %v4984_v54  ;;  %2694 = vmatpush.bf16.msra.mxu0 %v5024_v43  ;;  %v5051_v54 = vld [vmem:[#allocation15 + $0x278] sm:$0xff]  ;;  %v5044_v43 = vld [vmem:[#allocation15 + $0x240] sm:$0xff] }
 0x373   : > { %2704 = vmatpush.bf16.msrb.mxu1 %v5035_v53 }
 0x374   : > { %1847 = vmatmul.bf16.vlgmr.msra.gmra.mxu3 %v5765_v12  ;;  %1860 = vmatmul.bf16.vlgmr.msrb.gmra.mxu2 %v1272_v44  ;;  %v5011_v12 = vld [vmem:[#allocation15 + $0x138] sm:$0xff]  ;;  %v5042_v44 = vld [vmem:[#allocation15 + $0x230] sm:$0xff] }
 0x375   : > { %2617 = vmatpush.bf16.msrb.mxu3 %v4975_v60  ;;  %v5041_v60 = vld [vmem:[#allocation15 + $0x228] sm:$0xff] }
 0x376   : > { %2630 = vmatpush.bf16.msra.mxu2 %v4983_v57  ;;  %2695 = vmatpush.bf16.msra.mxu0 %v5023_v50  ;;  %v5040_v57 = vld [vmem:[#allocation15 + $0x220] sm:$0xff] }
 0x379   : > { %2618 = vmatpush.bf16.msrb.mxu3 %v4974_v52  ;;  %v5012_v52 = vld [vmem:[#allocation15 + $0x140] sm:$0xff] }
 0x37a   : > { %2631 = vmatpush.bf16.msra.mxu2 %v4982_v61  ;;  %2696 = vmatpush.bf16.msra.mxu0 %v5022_v56  ;;  %v5050_v61 = vld [vmem:[#allocation15 + $0x270] sm:$0xff] }
 0x37d   : > { %2619 = vmatpush.bf16.msrb.mxu3 %v4973_v55  ;;  %v1784_v55 = vadd.f32 %v5779_v63, %v1771_v47  ;;  %v5049_v63 = vld [vmem:[#allocation15 + $0x268] sm:$0xff] }
 0x37e   : > { %2632 = vmatpush.bf16.msra.mxu2 %v4981_v4  ;;  %v5033_v4 = vld [vmem:[#allocation15 + $0x1e8] sm:$0xff]  ;;  %2697 = vmatpush.bf16.msra.mxu0 %v5021_v1 }
 0x381   : > { %2620 = vmatpush.bf16.msrb.mxu3 %v4972_v58 }
 0x382   : > { %2633 = vmatpush.bf16.msra.mxu2 %v4980_v7  ;;  %v5038_v7 = vld [vmem:[#allocation15 + $0x210] sm:$0xff] }
 0x384   : > { %2621 = vmatmul.bf16.vlgmr.msrb.gmra.mxu3 %v1959_v22  ;;  %v5036_v22 = vld [vmem:[#allocation15 + $0x200] sm:$0xff] }
 0x385   : > { %2665 = vmatpush.bf16.msra.mxu3 %v5011_v12  ;;  %2634 = vmatmul.bf16.vlgmr.msra.gmra.mxu2 %v1960_v34  ;;  %v5034_v12 = vld [vmem:[#allocation15 + $0x1f0] sm:$0xff] }
 0x386   : > { %2678 = vmatpush.bf16.msrb.mxu2 %v5019_v10  ;;  %2705 = vmatpush.bf16.msrb.mxu1 %v5034_v12  ;;  %v5032_v10 = vld [vmem:[#allocation15 + $0x1e0] sm:$0xff] }
 0x387   : > { %v5783_v33 = vpop.f32.mrf.mxu1 }
 0x389   : > { %2666 = vmatpush.bf16.msra.mxu3 %v5010_v3 }
 0x38a   : > { %2679 = vmatpush.bf16.msrb.mxu2 %v5018_v15  ;;  %2706 = vmatpush.bf16.msrb.mxu1 %v5033_v4 }
 0x38d   : > { %2667 = vmatpush.bf16.msra.mxu3 %v5009_v6  ;;  %v5020_v6 = vld [vmem:[#allocation15 + $0x180] sm:$0xff] }
 0x38e   : > { %2680 = vmatpush.bf16.msrb.mxu2 %v5017_v20  ;;  %2698 = vmatpush.bf16.msra.mxu0 %v5020_v6  ;;  %v5031_v20 = vld [vmem:[#allocation15 + $0x1d8] sm:$0xff] }
 0x38f   : > { %v1889_v46 = vpop.f32.mrf.mxu1  ;;  %2707 = vmatpush.bf16.msrb.mxu1 %v5032_v10 }
 0x391   : > { %2668 = vmatpush.bf16.msra.mxu3 %v5008_v13 }
 0x392   : > { %2681 = vmatpush.bf16.msrb.mxu2 %v5016_v27  ;;  %v5046_v27 = vld [vmem:[#allocation15 + $0x250] sm:$0xff] }
 0x393   : > { %2708 = vmatpush.bf16.msrb.mxu1 %v5031_v20  ;;  %v5067_v20 = vld [vmem:[#allocation17 + $0x78] sm:$0xff] }
 0x395   : > { %2669 = vmatpush.bf16.msra.mxu3 %v5007_v17  ;;  %v1758_v17 = vperm.slane %v5788_v38, 1  ;;  %v1903_v38 = vlaneseq }
 0x396   : > { %2682 = vmatpush.bf16.msrb.mxu2 %v5015_v31  ;;  %v5045_v31 = vld [vmem:[#allocation15 + $0x248] sm:$0xff] }
 0x397   : > { %v1836_v23 = vadd.f32 %v5781_v8, %v1758_v17  ;;  %vm1905_vm4 = vcmp.lt.s32.totalorder %v1903_v38, 256  ;;  %v5072_v38 = vld [vmem:[#allocation17 + $0xa0] sm:$0xff] }
 0x399   : > { %2670 = vmatpush.bf16.msra.mxu3 %v5006_v24  ;;  %v5030_v24 = vld [vmem:[#allocation15 + $0x1d0] sm:$0xff] }
 0x39a   : > { %2683 = vmatpush.bf16.msrb.mxu2 %v5014_v41  ;;  %2709 = vmatpush.bf16.msrb.mxu1 %v5030_v24 }
 0x39d   : > { %2671 = vmatpush.bf16.msra.mxu3 %v5005_v28 }
 0x39e   : > { %2684 = vmatpush.bf16.msrb.mxu2 %v5013_v26  ;;  %2710 = vmatpush.bf16.msrb.mxu1 %v5029_v30  ;;  %v5057_v30 = vld [vmem:[#allocation17 + $0x28] sm:$0xff] }
 0x3a1   : > { %2672 = vmatpush.bf16.msra.mxu3 %v5004_v35 }
 0x3a2   : > { %2685 = vmatpush.bf16.msrb.mxu2 %v5012_v52  ;;  %2711 = vmatpush.bf16.msrb.mxu1 %v5028_v42 }
 0x3a5   : > { %2717 = vmatpush.bf16.msrb.mxu3 %v5043_v37 }
 0x3a6   : > { %2730 = vmatpush.bf16.msra.mxu2 %v5051_v54 }
 0x3a9   : > { %2718 = vmatpush.bf16.msrb.mxu3 %v5042_v44 }
 0x3aa   : > { %2731 = vmatpush.bf16.msra.mxu2 %v5050_v61  ;;  %v1934_v61 = vld [vmem:[#allocation6 + $0x8] sm:$0x30] }
 0x3ad   : > { %2719 = vmatpush.bf16.msrb.mxu3 %v5041_v60  ;;  %v1933_v60 = vld [vmem:[#allocation6] sm:$0x30] }
 0x3ae   : > { %2732 = vmatpush.bf16.msra.mxu2 %v5049_v63  ;;  %v1955_v52 = vrot.slane %v1933_v60, 4  ;;  %v5053_v60 = vld [vmem:[#allocation17 + $0x8] sm:$0xff] }
 0x3b0   : > { %v1967_v54 = vpack.c.bf16 %v1955_v52, %v1955_v52 }
 0x3b1   : > { %2720 = vmatpush.bf16.msrb.mxu3 %v5040_v57 }
 0x3b2   : > { %2733 = vmatpush.bf16.msra.mxu2 %v5048_v14 }
 0x3b5   : > { %2721 = vmatpush.bf16.msrb.mxu3 %v5039_v0  ;;  %v1956_v0 = vrot.slane %v1934_v61, 4  ;;  %v5080_v61 = vld [vmem:[#allocation17 + $0xe0] sm:$0xff] }
 0x3b6   : > { %2734 = vmatpush.bf16.msra.mxu2 %v5047_v21  ;;  %v5075_v21 = vld [vmem:[#allocation17 + $0xb8] sm:$0xff] }
 0x3b9   : > { %2722 = vmatpush.bf16.msrb.mxu3 %v5038_v7 }
 0x3ba   : > { %2735 = vmatpush.bf16.msra.mxu2 %v5046_v27 }
 0x3be   : > { %2736 = vmatpush.bf16.msra.mxu2 %v5045_v31 }
 0x3c2   : > { %2737 = vmatpush.bf16.msra.mxu2 %v5044_v43  ;;  %v5055_v43 = vld [vmem:[#allocation17 + $0x18] sm:$0xff] }
 0x3e2   : > { %v5792_v48 = vpop.f32.mrf.mxu0 }
 0x3e7   : > { %v1796_v58 = vpop.f32.mrf.mxu3  ;;  %v1809_v39 = vpop.f32.mrf.mxu2 }
 0x3e8   : > { %v1797_v59 = vadd.f32 %v1796_v58, %v1784_v55 }
 0x3ea   : > { %v1810_v2 = vadd.f32 %v1809_v39, %v1797_v59  ;;  %v1876_v3 = vpop.f32.mrf.mxu0 }
 0x3eb   : > { %v1968_v3 = vpack.c.bf16 %v1956_v0, %v1956_v0  ;;  %v5062_v0 = vld [vmem:[#allocation17 + $0x50] sm:$0xff] }
 0x3ec   : > { %v1823_v5 = vadd.f32 %v5777_v62, %v1810_v2  ;;  %v5037_v62 = vld [vmem:[#allocation15 + $0x208] sm:$0xff] }
 0x3ed   : > { %2723 = vmatpush.bf16.msrb.mxu3 %v5037_v62 }
 0x3ee   : > { %vm1891_vm15 = vcmp.ge.f32.partialorder %v1823_v5, 0.0  ;;  %v1893_v9 = vmul.f32 0.2, %v1823_v5 }
 0x3ef   : > { %v1798_v11 = vpop.f32.mrf.mxu3  ;;  %v1811_v13 = vpop.f32.mrf.mxu2 }
 0x3f0   : > { %v1895_v15 = vsel %vm1891_vm15, %v1823_v5, %v1893_v9  ;;  %v5236_v13 = vld [vmem:[%s5869_s10] ss:$0 sm:$0xff] }
 0x3f1   : > { %v1908_v16 = vrot.slane %v1895_v15, 7  ;;  %2724 = vmatpush.bf16.msrb.mxu3 %v5036_v22 }
 0x3f3   : > { %v1911_v18 = vsel %vm1900_vm0, %v1895_v15, %v1908_v16 }
 0x3f4   : > { %v1917_v19 = vrot.slane %v1911_v18, 6  ;;  %v5059_v18 = vld [vmem:[#allocation17 + $0x38] sm:$0xff] }
 0x3f6   : > { %1921 = vst [vmem:[#allocation6] sm:$0xc] %v1917_v19 }
 0x3f7   : > { %v1848_v49 = vpop.f32.mrf.mxu3  ;;  %v1861_v25 = vpop.f32.mrf.mxu2 }
 0x3f8   : > { %v1849_v28 = vadd.f32 %v1848_v49, %v1836_v23  ;;  %v5058_v23 = vld [vmem:[#allocation17 + $0x30] sm:$0xff] }
 0x3f9   : > { %v5066_v49 = vld [vmem:[#allocation17 + $0x70] sm:$0xff] }
 0x3fa   : > { %v1862_v29 = vadd.f32 %v1861_v25, %v1849_v28  ;;  %v5074_v25 = vld [vmem:[#allocation17 + $0xb0] sm:$0xff] }
 0x3fc   : > { %v1875_v32 = vadd.f32 %v5792_v48, %v1862_v29 }
 0x3fd   : > { %v1927_v34 = vld [vmem:[#allocation6] sm:$0x6]  ;;  %v1931_v51 = vld [vmem:[#allocation6] sm:$0x18] }
 0x3fe   : > { %v1929_v35 = vld [vmem:[#allocation6] sm:$0xc]  ;;  %v1888_v8 = vadd.f32 %v5783_v33, %v1875_v32  ;;  %v1937_v36 = vrot.slane %v1927_v34, 1  ;;  %v1949_v53 = vrot.slane %v1931_v51, 3  ;;  %v5065_v32 = vld [vmem:[#allocation17 + $0x68] sm:$0xff] }
 0x3ff   : > { %v1943_v37 = vrot.slane %v1929_v35, 2  ;;  %v1850_v40 = vpop.f32.mrf.mxu3  ;;  %v1863_v41 = vpop.f32.mrf.mxu2  ;;  %v5073_v34 = vld [vmem:[#allocation17 + $0xa8] sm:$0xff] }
 0x400   : > { %vm1892_vm3 = vcmp.ge.f32.partialorder %v1888_v8, 0.0  ;;  %v1894_v44 = vmul.f32 0.2, %v1888_v8  ;;  %v1961_v45 = vpack.c.bf16 %v1937_v36, %v1937_v36  ;;  %v1965_v57 = vpack.c.bf16 %v1949_v53, %v1949_v53  ;;  %v5056_v36 = vld [vmem:[#allocation17 + $0x20] sm:$0xff] }
 0x401   : > { %v1963_v26 = vpack.c.bf16 %v1943_v37, %v1943_v37  ;;  %v5064_v37 = vld [vmem:[#allocation17 + $0x60] sm:$0xff] }
 0x402   : > { %v1896_v46 = vsel %vm1892_vm3, %v1888_v8, %v1894_v44  ;;  %2647 = vmatmul.bf16.vlgmr.msrb.gmra.mxu0 %v1961_v45  ;;  %v5063_v45 = vld [vmem:[#allocation17 + $0x58] sm:$0xff] }
 0x403   : > { %2673 = vmatmul.bf16.vlgmr.msra.gmra.mxu3 %v1963_v26  ;;  %v1899_v33 = vrot.slane %v1896_v46, 7  ;;  %v5071_v26 = vld [vmem:[#allocation17 + $0x98] sm:$0xff] }
 0x404   : > { %3118 = vmatpush.bf16.msra.mxu3 %v5067_v20 }
 0x405   : > { %v1901_v47 = vsel %vm1900_vm0, %v1895_v15, %v1899_v33  ;;  %v1912_v48 = vsel %vm1900_vm0, %v1896_v46, %v1899_v33  ;;  %v5054_v46 = vld [vmem:[#allocation17 + $0x10] sm:$0xff] }
 0x406   : > { %1907 = vst.msk [vmem:[%s783_s24] sm:$0x3] %vm1905_vm4, %v1901_v47  ;;  %v1918_v50 = vrot.slane %v1912_v48, 6 }
 0x407   : > { %v2622_v63 = vpop.f32.mrf.mxu3 }
 0x408   : > { %1922 = vst [vmem:[#allocation6 + $0x8] sm:$0xc] %v1918_v50  ;;  %v2635_v6 = vpop.f32.mrf.mxu2  ;;  %v2623_v14 = vadd.f32 %v5236_v13, %v2622_v63  ;;  %3119 = vmatpush.bf16.msra.mxu3 %v5066_v49  ;;  %v5061_v63 = vld [vmem:[#allocation17 + $0x48] sm:$0xff]  ;;  %v5088_v13 = vld [vmem:[#allocation17 + $0x120] sm:$0xff] }
 0x40a   : > { %v2636_v17 = vadd.f32 %v2635_v6, %v2623_v14  ;;  %v5077_v6 = vld [vmem:[#allocation17 + $0xc8] sm:$0xff]  ;;  %v5087_v14 = vld [vmem:[#allocation17 + $0x118] sm:$0xff] }
 0x40c   : > { %3120 = vmatpush.bf16.msra.mxu3 %v5065_v32 }
 0x40f   : > { %v1928_v55 = vld [vmem:[#allocation6 + $0x8] sm:$0x6]  ;;  %v1932_v1 = vld [vmem:[#allocation6 + $0x8] sm:$0x18]  ;;  %v2624_v5 = vpop.f32.mrf.mxu3 }
 0x410   : > { %v1930_v56 = vld [vmem:[#allocation6 + $0x8] sm:$0xc]  ;;  %v1938_v58 = vrot.slane %v1928_v55, 1  ;;  %v1950_v2 = vrot.slane %v1932_v1, 3  ;;  %v2637_v7 = vpop.f32.mrf.mxu2  ;;  %3121 = vmatpush.bf16.msra.mxu3 %v5064_v37  ;;  %v5052_v55 = vld [vmem:[#allocation17] sm:$0xff]  ;;  %v5069_v5 = vld [vmem:[#allocation17 + $0x88] sm:$0xff] }
 0x411   : > { %v1944_v39 = vrot.slane %v1930_v56, 2  ;;  %v5091_v56 = vld [vmem:[#allocation17 + $0x138] sm:$0xff]  ;;  %v5089_v7 = vld [vmem:[#allocation17 + $0x128] sm:$0xff] }
 0x412   : > { %2699 = vmatmul.bf16.vlgmr.msra.gmra.mxu0 %v1965_v57  ;;  %v1962_v59 = vpack.c.bf16 %v1938_v58, %v1938_v58  ;;  %v1966_v4 = vpack.c.bf16 %v1950_v2, %v1950_v2  ;;  %v5079_v1 = vld [vmem:[#allocation17 + $0xd8] sm:$0xff]  ;;  %v5070_v2 = vld [vmem:[#allocation17 + $0x90] sm:$0xff] }
 0x413   : > { %v1964_v12 = vpack.c.bf16 %v1944_v39, %v1944_v39  ;;  %2725 = vmatmul.bf16.vlgmr.msrb.gmra.mxu3 %v1967_v54  ;;  %v5083_v54 = vld [vmem:[#allocation17 + $0xf8] sm:$0xff] }
 0x414   : > { %2660 = vmatmul.bf16.vlgmr.msra.gmra.mxu1 %v1962_v59  ;;  %3122 = vmatpush.bf16.msra.mxu3 %v5063_v45  ;;  %v2746_v39 = vld [vmem:[%s5870_s11] sm:$0x3]  ;;  %v5082_v59 = vld [vmem:[#allocation17 + $0xf0] sm:$0xff] }
 0x415   : > { %2686 = vmatmul.bf16.vlgmr.msrb.gmra.mxu2 %v1964_v12  ;;  %3105 = vmatpush.bf16.msra.mxu1 %v5059_v18  ;;  %v5081_v12 = vld [vmem:[#allocation17 + $0xe8] sm:$0xff] }
 0x416   : > { %3131 = vmatpush.bf16.msrb.mxu2 %v5075_v21 }
 0x418   : > { %3123 = vmatpush.bf16.msra.mxu3 %v5062_v0 }
 0x419   : > { %3106 = vmatpush.bf16.msra.mxu1 %v5058_v23 }
 0x41a   : > { %3132 = vmatpush.bf16.msrb.mxu2 %v5074_v25 }
 0x41c   : > { %3124 = vmatpush.bf16.msra.mxu3 %v5061_v63  ;;  %v5106_v63 = vld [vmem:[#allocation18 + $0x70] sm:$0xff] }
 0x41d   : > { %3107 = vmatpush.bf16.msra.mxu1 %v5057_v30 }
 0x41e   : > { %3133 = vmatpush.bf16.msrb.mxu2 %v5073_v34 }
 0x421   : > { %3108 = vmatpush.bf16.msra.mxu1 %v5056_v36 }
 0x422   : > { %3134 = vmatpush.bf16.msrb.mxu2 %v5072_v38 }
 0x424   : > { %2712 = vmatmul.bf16.vlgmr.msrb.gmra.mxu1 %v1966_v4  ;;  %v5090_v4 = vld [vmem:[#allocation17 + $0x130] sm:$0xff] }
 0x425   : > { %2738 = vmatmul.bf16.vlgmr.msra.gmra.mxu2 %v1968_v3  ;;  %3109 = vmatpush.bf16.msra.mxu1 %v5055_v43  ;;  %v5078_v3 = vld [vmem:[#allocation17 + $0xd0] sm:$0xff] }
 0x426   : > { %3135 = vmatpush.bf16.msrb.mxu2 %v5071_v26 }
 0x429   : > { %3110 = vmatpush.bf16.msra.mxu1 %v5054_v46 }
 0x42a   : > { %3136 = vmatpush.bf16.msrb.mxu2 %v5070_v2 }
 0x42d   : > { %3111 = vmatpush.bf16.msra.mxu1 %v5053_v60  ;;  %v5110_v60 = vld [vmem:[#allocation18 + $0x90] sm:$0xff] }
 0x42e   : > { %3137 = vmatpush.bf16.msrb.mxu2 %v5069_v5  ;;  %v5105_v5 = vld [vmem:[#allocation18 + $0x68] sm:$0xff] }
 0x431   : > { %3112 = vmatpush.bf16.msra.mxu1 %v5052_v55  ;;  %v5107_v55 = vld [vmem:[#allocation18 + $0x78] sm:$0xff] }
 0x435   : > { %3157 = vmatpush.bf16.msrb.mxu1 %v5091_v56  ;;  %v5097_v56 = vld [vmem:[#allocation18 + $0x28] sm:$0xff] }
 0x439   : > { %3158 = vmatpush.bf16.msrb.mxu1 %v5090_v4  ;;  %v5092_v4 = vld [vmem:[#allocation18] sm:$0xff] }
 0x43d   : > { %3159 = vmatpush.bf16.msrb.mxu1 %v5089_v7  ;;  %v5103_v7 = vld [vmem:[#allocation18 + $0x58] sm:$0xff] }
 0x441   : > { %3160 = vmatpush.bf16.msrb.mxu1 %v5088_v13 }
 0x445   : > { %3161 = vmatpush.bf16.msrb.mxu1 %v5087_v14 }
 0x47f   : > { %v2648_v9 = vpop.f32.mrf.mxu0 }
 0x480   : > { %v2649_v19 = vadd.f32 %v2648_v9, %v2636_v17  ;;  %v5060_v9 = vld [vmem:[#allocation17 + $0x40] sm:$0xff] }
 0x481   : > { %3125 = vmatpush.bf16.msra.mxu3 %v5060_v9  ;;  %v5084_v17 = vld [vmem:[#allocation17 + $0x100] sm:$0xff]  ;;  %v5102_v9 = vld [vmem:[#allocation18 + $0x50] sm:$0xff] }
 0x486   : > { %v2674_v10 = vpop.f32.mrf.mxu3 }
 0x487   : > { %v2650_v11 = vpop.f32.mrf.mxu0 }
 0x488   : > { %v5076_v11 = vld [vmem:[#allocation17 + $0xc0] sm:$0xff] }
 0x48e   : > { %v2676_v15 = vpop.f32.mrf.mxu3 }
 0x48f   : > { %v2700_v16 = vpop.f32.mrf.mxu0  ;;  %v5086_v15 = vld [vmem:[#allocation17 + $0x110] sm:$0xff] }
 0x490   : > { %3162 = vmatpush.bf16.msrb.mxu1 %v5086_v15 }
 0x491   : > { %v2661_v62 = vpop.f32.mrf.mxu1 }
 0x492   : > { %v2662_v24 = vadd.f32 %v2661_v62, %v2649_v19 }
 0x494   : > { %v2675_v31 = vadd.f32 %v2674_v10, %v2662_v24  ;;  %v5068_v10 = vld [vmem:[#allocation17 + $0x80] sm:$0xff] }
 0x495   : > { %3138 = vmatpush.bf16.msrb.mxu2 %v5068_v10  ;;  %v5101_v10 = vld [vmem:[#allocation18 + $0x48] sm:$0xff] }
 0x496   : > { %v2726_v22 = vpop.f32.mrf.mxu3 }
 0x497   : > { %v2702_v28 = vpop.f32.mrf.mxu0 }
 0x498   : > { %v2687_v27 = vpop.f32.mrf.mxu2 }
 0x499   : > { %v2663_v29 = vpop.f32.mrf.mxu1  ;;  %v2688_v35 = vadd.f32 %v2687_v27, %v2675_v31  ;;  %v5237_v31 = vld [vmem:[%s5872_s13] ss:$0 sm:$0xff] }
 0x49a   : > { %v5111_v29 = vld [vmem:[#allocation18 + $0x98] sm:$0xff] }
 0x49b   : > { %v2701_v41 = vadd.f32 %v2700_v16, %v2688_v35  ;;  %v5085_v16 = vld [vmem:[#allocation17 + $0x108] sm:$0xff]  ;;  %3414 = vmatpush.bf16.msrb.mxu3 %v5111_v29 }
 0x49c   : > { %3163 = vmatpush.bf16.msrb.mxu1 %v5085_v16 }
 0x49e   : > { %v2728_v8 = vpop.f32.mrf.mxu3 }
 0x49f   : > { %3415 = vmatpush.bf16.msrb.mxu3 %v5110_v60 }
 0x4a0   : > { %v2689_v40 = vpop.f32.mrf.mxu2  ;;  %3164 = vmatpush.bf16.msrb.mxu1 %v5084_v17 }
 0x4a1   : > { %v2713_v42 = vpop.f32.mrf.mxu1 }
 0x4a2   : > { %v2714_v44 = vadd.f32 %v2713_v42, %v2701_v41 }
 0x4a4   : > { %v2727_v33 = vadd.f32 %v2726_v22, %v2714_v44 }
 0x4a8   : > { %v2739_v47 = vpop.f32.mrf.mxu2 }
 0x4a9   : > { %v2740_v48 = vadd.f32 %v2739_v47, %v2727_v33  ;;  %v2715_v50 = vpop.f32.mrf.mxu1 }
 0x4aa   : > { %v3173_v50 = vld [vmem:[%s5873_s14] sm:$0xf] }
 0x4ab   : > { %vm2743_vm6 = vcmp.ge.f32.partialorder %v2740_v48, 0.0  ;;  %v2744_v51 = vmul.f32 0.2, %v2740_v48 }
 0x4ad   : > { %v2745_v52 = vsel %vm2743_vm6, %v2740_v48, %v2744_v51  ;;  %v5109_v51 = vld [vmem:[#allocation18 + $0x88] sm:$0xff] }
 0x4ae   : > { %v2747_v53 = vpack.c.bf16 %v2745_v52, %v2745_v52  ;;  %3416 = vmatpush.bf16.msrb.mxu3 %v5109_v51  ;;  %v5108_v52 = vld [vmem:[#allocation18 + $0x80] sm:$0xff] }
 0x4b0   : > { %v2741_v57 = vpop.f32.mrf.mxu2  ;;  %v2753_v58 = vsel %vm1900_vm0, %v2747_v53, 0  ;;  %v5099_v53 = vld [vmem:[#allocation18 + $0x38] sm:$0xff] }
 0x4b1   : > { %2762 = vmatpush.bf16.msrb.mxu0 %v2753_v58  ;;  %3384 = vmatpush.bf16.msra.mxu2 %v5099_v53  ;;  %v5096_v57 = vld [vmem:[#allocation18 + $0x20] sm:$0xff]  ;;  %v5095_v58 = vld [vmem:[#allocation18 + $0x18] sm:$0xff] }
 0x4b2   : > { %3417 = vmatpush.bf16.msrb.mxu3 %v5108_v52  ;;  %v5118_v52 = vld [vmem:[#allocation20 + $0x28] sm:$0xff]  ;;  %v5117_v53 = vld [vmem:[#allocation20 + $0x20] sm:$0xff] }
 0x4b4   : > { %4567 = vmatmul.msk.bf16.vlgmr.msrb.gmra.mxu0 %vm2748_vm7, %v2746_v39  ;;  %v5094_v39 = vld [vmem:[#allocation18 + $0x10] sm:$0xff] }
 0x4b5   : > { %3144 = vmatpush.bf16.msra.mxu0 %v5083_v54  ;;  %v5098_v54 = vld [vmem:[#allocation18 + $0x30] sm:$0xff] }
 0x4b6   : > { %3385 = vmatpush.bf16.msra.mxu2 %v5098_v54  ;;  %v5116_v54 = vld [vmem:[#allocation20 + $0x18] sm:$0xff] }
 0x4b9   : > { %3145 = vmatpush.bf16.msra.mxu0 %v5082_v59 }
 0x4ba   : > { %3386 = vmatpush.bf16.msra.mxu2 %v5097_v56  ;;  %v5114_v56 = vld [vmem:[#allocation20 + $0x8] sm:$0xff] }
 0x4bd   : > { %3146 = vmatpush.bf16.msra.mxu0 %v5081_v12  ;;  %v5093_v12 = vld [vmem:[#allocation18 + $0x8] sm:$0xff] }
 0x4be   : > { %3387 = vmatpush.bf16.msra.mxu2 %v5096_v57  ;;  %v5113_v57 = vld [vmem:[#allocation20] sm:$0xff] }
 0x4c1   : > { %3147 = vmatpush.bf16.msra.mxu0 %v5080_v61 }
 0x4c2   : > { %3388 = vmatpush.bf16.msra.mxu2 %v5095_v58 }
 0x4c5   : > { %3148 = vmatpush.bf16.msra.mxu0 %v5079_v1 }
 0x4c6   : > { %3389 = vmatpush.bf16.msra.mxu2 %v5094_v39 }
 0x4c9   : > { %3149 = vmatpush.bf16.msra.mxu0 %v5078_v3 }
 0x4ca   : > { %3390 = vmatpush.bf16.msra.mxu2 %v5093_v12 }
 0x4cd   : > { %3150 = vmatpush.bf16.msra.mxu0 %v5077_v6  ;;  %v5104_v6 = vld [vmem:[#allocation18 + $0x60] sm:$0xff] }
 0x4ce   : > { %3391 = vmatpush.bf16.msra.mxu2 %v5092_v4 }
 0x4d1   : > { %3151 = vmatpush.bf16.msra.mxu0 %v5076_v11  ;;  %v5100_v11 = vld [vmem:[#allocation18 + $0x40] sm:$0xff] }
 0x531   : > { %v2764_v62 = vpop.f32.mrf.mxu0 }
 0x532   : > { %2769 = vst [vmem:[#allocation7 + $0x2] sm:$0xf] %v2764_v62 }
 0x539   : > { %v2766_v18 = vpop.f32.mrf.mxu0  ;;  %v2771_v19 = vld [vmem:[#allocation7] sm:$0xf]  ;;  %v2775_v27 = vld [vmem:[#allocation7 + $0x4] sm:$0xf] }
 0x53a   : > { %v2772_v20 = vld [vmem:[#allocation7 + $0x1] sm:$0xf]  ;;  %v2776_v22 = vpack.c.bf16 %v2771_v19, %v2771_v19  ;;  %v2780_v28 = vpack.c.bf16 %v2775_v27, %v2775_v27 }
 0x53b   : > { %v2773_v21 = vld [vmem:[#allocation7 + $0x2] sm:$0xf]  ;;  %v2777_v23 = vpack.c.bf16 %v2772_v20, %v2772_v20 }
 0x53c   : > { %v2778_v24 = vpack.c.bf16 %v2773_v21, %v2773_v21  ;;  %v2774_v49 = vld [vmem:[#allocation7 + $0x3] sm:$0xf]  ;;  %3113 = vmatmul.bf16.vlgmr.msra.gmra.mxu1 %v2776_v22 }
 0x53d   : > { %v2779_v25 = vpack.c.bf16 %v2774_v49, %v2774_v49  ;;  %3126 = vmatmul.bf16.vlgmr.msra.gmra.mxu3 %v2777_v23 }
 0x53e   : > { %3139 = vmatmul.bf16.vlgmr.msrb.gmra.mxu2 %v2778_v24  ;;  %v5238_v24 = vld [vmem:[%s5875_s16] ss:$0 sm:$0xff] }
 0x53f   : > { %3152 = vmatmul.bf16.vlgmr.msra.gmra.mxu0 %v2779_v25 }
 0x54c   : > { %3165 = vmatmul.bf16.vlgmr.msrb.gmra.mxu1 %v2780_v28 }
 0x5b9   : > { %v3114_v30 = vpop.f32.mrf.mxu1 }
 0x5ba   : > { %v3115_v34 = vadd.f32 %v5237_v31, %v3114_v30 }
 0x5bc   : > { %v3153_v32 = vpop.f32.mrf.mxu0 }
 0x5c0   : > { %v3127_v35 = vpop.f32.mrf.mxu3 }
 0x5c1   : > { %v3128_v8 = vadd.f32 %v3127_v35, %v3115_v34  ;;  %v3140_v36 = vpop.f32.mrf.mxu2  ;;  %v3116_v37 = vpop.f32.mrf.mxu1  ;;  %v5112_v35 = vld [vmem:[%s5876_s17] sm:$0xff] }
 0x5c2   : > { %v5120_v37 = vld [vmem:[#allocation20 + $0x38] sm:$0xff] }
 0x5c3   : > { %v3141_v40 = vadd.f32 %v3140_v36, %v3128_v8  ;;  %v5122_v8 = vld [vmem:[#allocation20 + $0x48] sm:$0xff]  ;;  %v5121_v36 = vld [vmem:[#allocation20 + $0x40] sm:$0xff]  ;;  %3587 = vmatpush.bf16.msra.mxu3 %v5120_v37 }
 0x5c4   : > { %v3155_v38 = vpop.f32.mrf.mxu0  ;;  %3607 = vmatpush.bf16.msrb.mxu2 %v5122_v8 }
 0x5c5   : > { %v3154_v43 = vadd.f32 %v3153_v32, %v3141_v40  ;;  %v5119_v38 = vld [vmem:[#allocation20 + $0x30] sm:$0xff] }
 0x5c7   : > { %3588 = vmatpush.bf16.msra.mxu3 %v5119_v38 }
 0x5c8   : > { %v3129_v41 = vpop.f32.mrf.mxu3  ;;  %3608 = vmatpush.bf16.msrb.mxu2 %v5121_v36 }
 0x5c9   : > { %v3142_v42 = vpop.f32.mrf.mxu2  ;;  %v3166_v44 = vpop.f32.mrf.mxu1 }
 0x5ca   : > { %v3167_v45 = vadd.f32 %v3166_v44, %v3154_v43 }
 0x5cb   : > { %3589 = vmatpush.bf16.msra.mxu3 %v5118_v52 }
 0x5cc   : > { %vm3170_vm8 = vcmp.ge.f32.partialorder %v3167_v45, 0.0  ;;  %v3171_v26 = vmul.f32 0.2, %v3167_v45 }
 0x5ce   : > { %v3172_v46 = vsel %vm3170_vm8, %v3167_v45, %v3171_v26 }
 0x5cf   : > { %v3174_v33 = vpack.c.bf16 %v3172_v46, %v3172_v46  ;;  %3590 = vmatpush.bf16.msra.mxu3 %v5117_v53 }
 0x5d1   : > { %v3168_v47 = vpop.f32.mrf.mxu1  ;;  %v3181_v48 = vsel %vm3179_vm11, %v3174_v33, 0 }
 0x5d2   : > { %3190 = vmatpush.bf16.msrb.mxu0 %v3181_v48 }
 0x5d3   : > { %3591 = vmatpush.bf16.msra.mxu3 %v5116_v54 }
 0x5d5   : > { %4728 = vmatmul.msk.bf16.vlgmr.msrb.gmra.mxu0 %vm3175_vm12, %v3173_v50 }
 0x5d6   : > { %3397 = vmatpush.bf16.msra.mxu0 %v5107_v55  ;;  %v5115_v55 = vld [vmem:[#allocation20 + $0x10] sm:$0xff] }
 0x5d7   : > { %3592 = vmatpush.bf16.msra.mxu3 %v5115_v55 }
 0x5da   : > { %3398 = vmatpush.bf16.msra.mxu0 %v5106_v63 }
 0x5db   : > { %3593 = vmatpush.bf16.msra.mxu3 %v5114_v56 }
 0x5de   : > { %3399 = vmatpush.bf16.msra.mxu0 %v5105_v5 }
 0x5df   : > { %3594 = vmatpush.bf16.msra.mxu3 %v5113_v57 }
 0x5e2   : > { %3400 = vmatpush.bf16.msra.mxu0 %v5104_v6 }
 0x5e6   : > { %3401 = vmatpush.bf16.msra.mxu0 %v5103_v7 }
 0x5ea   : > { %3402 = vmatpush.bf16.msra.mxu0 %v5102_v9 }
 0x5ee   : > { %3403 = vmatpush.bf16.msra.mxu0 %v5101_v10 }
 0x5f2   : > { %3404 = vmatpush.bf16.msra.mxu0 %v5100_v11 }
 0x652   : > { %v3192_v59 = vpop.f32.mrf.mxu0 }
 0x653   : > { %3197 = vst.msk [vmem:[#allocation8 + $0x2] sm:$0xff] %vm900_vm9, %v3192_v59 }
 0x65a   : > { %v3194_v61 = vpop.f32.mrf.mxu0  ;;  %v3202_v1 = vld [vmem:[#allocation8 + $0x3] sm:$0xff] }
 0x65b   : > { %v3200_v0 = vld [vmem:[#allocation8 + $0x1] sm:$0xff]  ;;  %3209 = vrot.lane.b32.xlu0 %v3202_v1, %s5491_s23 }
 0x65c   : > { %v3203_v2 = vld [vmem:[#allocation8 + $0x4] sm:$0xff]  ;;  %3205 = vrot.lane.b32.xlu2 %v3200_v0, %s5491_s23 }
 0x65d   : > { %v3216_v3 = vpack.c.bf16 %v3203_v2, %v3203_v2  ;;  %v3199_v14 = vld [vmem:[#allocation8] sm:$0xff] }
 0x65e   : > { %v3201_v62 = vld [vmem:[#allocation8 + $0x2] sm:$0xff] }
 0x65f   : > { %4809 = vmatmul.msk.bf16.vlgmr.msrb.gmra.mxu3 %vm900_vm9, %v3216_v3 }
 0x6b6   : > { %v3206_v13 = vpop.permute.xlu2 %3205 }
 0x6b7   : > { %v3212_v15 = vsel %vm900_vm9, %v3199_v14, %v3206_v13  ;;  %v5239_v14 = vld [vmem:[%s5878_s19] ss:$0 sm:$0xff] }
 0x6b8   : > { %v3214_v16 = vpack.c.bf16 %v3212_v15, %v3212_v15 }
 0x6ba   : > { %3392 = vmatmul.bf16.vlgmr.msra.gmra.mxu2 %v3214_v16 }
 0x6cd   : > { %v3210_v17 = vpop.permute.xlu0 %3209 }
 0x6ce   : > { %v3213_v18 = vsel %vm900_vm9, %v3201_v62, %v3210_v17 }
 0x6cf   : > { %v3215_v19 = vpack.c.bf16 %v3213_v18, %v3213_v18 }
 0x6d1   : > { %3405 = vmatmul.bf16.vlgmr.msra.gmra.mxu0 %v3215_v19 }
 0x6e2   : > { %v3419_v20 = vpop.f32.mrf.mxu3 }
 0x6ea   : > { %v3421_v21 = vpop.f32.mrf.mxu3 }
 0x73d   : > { %v3393_v22 = vpop.f32.mrf.mxu2 }
 0x73e   : > { %v3394_v49 = vadd.f32 %v5238_v24, %v3393_v22 }
 0x745   : > { %v3395_v23 = vpop.f32.mrf.mxu2 }
 0x74e   : > { %v3406_v25 = vpop.f32.mrf.mxu0 }
 0x74f   : > { %v3407_v27 = vadd.f32 %v3406_v25, %v3394_v49 }
 0x751   : > { %v3420_v28 = vadd.f32 %v3419_v20, %v3407_v27 }
 0x753   : > { %vm3423_vm13 = vcmp.ge.f32.partialorder %v3420_v28, 0.0  ;;  %v3424_v29 = vmul.f32 0.2, %v3420_v28 }
 0x755   : > { %v3425_v30 = vsel %vm3423_vm13, %v3420_v28, %v3424_v29 }
 0x756   : > { %v3408_v31 = vpop.f32.mrf.mxu0  ;;  %v3428_v32 = vpack.c.bf16 %v3425_v30, %v3425_v30 }
 0x758   : > { %v3438_v34 = vsel %vm854_vm2, %v3428_v32, 0 }
 0x759   : > { %3447 = vmatpush.bf16.msra.mxu1 %v3438_v34 }
 0x75c   : > { %4814 = vmatmul.msk.bf16.vlgmr.msra.gmra.mxu1 %vm789_vm1, %v5112_v35 }
 0x7d9   : > { %v3449_v40 = vpop.f32.mrf.mxu1 }
 0x7da   : > { %3455 = vst.msk [vmem:[#allocation9 + $0x2] sm:$0xff] %vm823_vm5, %v3449_v40 }
 0x7e1   : > { %v3451_v41 = vpop.f32.mrf.mxu1  ;;  %v3460_v42 = vld [vmem:[#allocation9 + $0x1] sm:$0xff] }
 0x7e2   : > { %3456 = vst.msk [vmem:[#allocation9 + $0xa] sm:$0xff] %vm823_vm5, %v3451_v41  ;;  %v3462_v43 = vld [vmem:[#allocation9 + $0x2] sm:$0xff] }
 0x7e3   : > { %v3458_v2 = vld [vmem:[#allocation9] sm:$0xff] }
 0x7e9   : > { %v3466_v44 = vld [vmem:[#allocation9 + $0x4] sm:$0xff]  ;;  %v3467_v45 = vld [vmem:[#allocation9 + $0xc] sm:$0xff] }
 0x7ea   : > { %v3461_v26 = vld [vmem:[#allocation9 + $0x9] sm:$0xff]  ;;  %v3499_v46 = vpack.c.bf16 %v3467_v45, %v3466_v44 }
 0x7eb   : > { %v5218_v33 = vpack.i.bf16 %v3461_v26, %v3460_v42  ;;  %v3464_v47 = vld [vmem:[#allocation9 + $0x3] sm:$0xff]  ;;  %v3465_v48 = vld [vmem:[#allocation9 + $0xb] sm:$0xff] }
 0x7ec   : > { %v3463_v50 = vld [vmem:[#allocation9 + $0xa] sm:$0xff]  ;;  %v5228_v60 = vpack.i.bf16 %v3465_v48, %v3464_v47  ;;  %4855 = vmatmul.msk.bf16.vlgmr.msrb.gmra.mxu2 %vm823_vm5, %v3499_v46 }
 0x7ed   : > { %v5223_v51 = vpack.i.bf16 %v3463_v50, %v3462_v43  ;;  %5219 = vrot.lane.b32.xlu1 %v5218_v33, %s5489_s26  ;;  %v3459_v3 = vld [vmem:[#allocation9 + $0x8] sm:$0xff] }
 0x7ee   : > { %5229 = vrot.lane.b32.xlu0 %v5228_v60, %s5490_s29 }
 0x7ef   : > { %5224 = vrot.lane.b32.xlu2 %v5223_v51, %s5491_s23 }
 0x849   : > { %v5225_v58 = vpop.permute.xlu2 %5224 }
 0x84a   : > { %v5227_v1 = vunpack.i.h.bf16 %v5225_v58  ;;  %v5226_v0 = vunpack.i.l.bf16 %v5225_v58 }
 0x85f   : > { %v5220_v39 = vpop.permute.xlu1 %5219 }
 0x860   : > { %v5222_v59 = vunpack.i.h.bf16 %v5220_v39  ;;  %v5221_v12 = vunpack.i.l.bf16 %v5220_v39  ;;  %v5230_v61 = vpop.permute.xlu0 %5229 }
 0x861   : > { %v5232_v5 = vunpack.i.h.bf16 %v5230_v61  ;;  %v5231_v6 = vunpack.i.l.bf16 %v5230_v61 }
 0x862   : > { %v3492_v4 = vsel %vm823_vm5, %v3458_v2, %v5221_v12  ;;  %v3493_v63 = vsel %vm823_vm5, %v3459_v3, %v5222_v59 }
 0x863   : > { %v3494_v7 = vsel %vm900_vm9, %v3492_v4, %v5226_v0  ;;  %v3495_v9 = vsel %vm900_vm9, %v3493_v63, %v5227_v1 }
 0x864   : > { %v3496_v10 = vsel %vm902_vm10, %v3494_v7, %v5231_v6  ;;  %v3497_v11 = vsel %vm902_vm10, %v3495_v9, %v5232_v5 }
 0x865   : > { %v3498_v13 = vpack.c.bf16 %v3497_v11, %v3496_v10 }
 0x867   : > { %3595 = vmatmul.bf16.vlgmr.msra.gmra.mxu3 %v3498_v13 }
 0x86f   : > { %v3610_v15 = vpop.f32.mrf.mxu2 }
 0x877   : > { %v3612_v20 = vpop.f32.mrf.mxu2 }
 0x8ea   : > { %v3596_v16 = vpop.f32.mrf.mxu3 }
 0x8eb   : > { %v3597_v17 = vadd.f32 %v5239_v14, %v3596_v16 }
 0x8ed   : > { %v3611_v62 = vadd.f32 %v3610_v15, %v3597_v17 }
 0x8ef   : > { %3615 = vst.msk [vmem:[%s779_s20] sm:$0xff] %vm789_vm1, %v3611_v62 }
 0x8f2   : > { %v3598_v18 = vpop.f32.mrf.mxu3 }
 0x8f3   : > { %v3599_v19 = vadd.f32 %v5239_v14, %v3598_v18 }
 0x8f5   : > { %v3613_v21 = vadd.f32 %v3612_v20, %v3599_v19 }
 0x8f7   : > { %3616 = vst.msk [vmem:[%s779_s20 + $0x8] sm:$0xff] %vm789_vm1, %v3613_v21 }
 0x8f8 PF: > { %s5906_s0 = sld [smem:[#allocation25_spill]] }
 0x8fe   : > { %s36_s2 = sadd.s32 1, %s5906_s0  }
 0x8ff   : > { %p33_p7 = scmp.ge.s32.totalorder %s36_s2, 4  }
 0x901   :  { %35 = sbr.rel (!%p33_p7) target bundleno = 15 (0xf), region = 187 }
 0x906   :  { %3652 = vsyncpa [#allocation11], 1 }
 0x907   :  { %3654 = vsyncpa [#allocation11 + $0x1], 1 }
 0x908   :  { %3655 = vsyncpa [#allocation13], 1 }
 0x909   :  { %3656 = vsyncpa [#allocation16], 1 }
 0x90a   :  { %3657 = vsyncpa [#allocation19], 1 }

</bundles_post_ra>
